<compile_context>
chip_gen: v7x
topology: tpu7x:2x2x1
jax: 0.10.0
libtpu: 0.0.40
codegen_flags: <defaults>
</compile_context>

<pallas_src>
import jax
import jax.numpy as jnp
from jax.experimental import pallas as pl
from jax.experimental.pallas import tpu as pltpu


def _fusion_attention_kernel(x_ref, wa_ref, aux_ref, vec_ref, attw_ref):
    # x_ref:    (TB, S, D)  TB batch elements of the (padded) input
    # wa_ref:   (D, D)      attention_matrix weight, (in, out) layout
    # aux_ref:  (3, D)      row 0 = attention bias, row 1 = project weight row,
    #                       row 2 = [project bias, 0, ...]
    # vec_ref:  (TB, D)     output attention_vec block
    # attw_ref: (TB, S)     output attention_weight block
    TB, S, D = x_ref.shape
    x = x_ref[...]                                   # native dtype, no f32 copy

    # query_project = Linear(D, D)(inputs): one MXU pass over all TB*S rows.
    qp = jnp.dot(x.reshape(TB * S, D), wa_ref[...],
                 preferred_element_type=jnp.float32)
    qp = qp + aux_ref[0:1, :]                        # + ba, broadcast over rows

    # F.leaky_relu (negative_slope = 0.01): single vmax.
    qp = jnp.maximum(qp, 0.01 * qp)

    # project_value = Linear(D, 1)(query_project): VPU multiply + lane reduce
    # over D (MXU stays free; result lands lane-dense over S as (TB, S)).
    pv = jnp.sum(qp.reshape(TB, S, D) * aux_ref[1:2, :], axis=-1)   # (TB, S)
    pv = pv + aux_ref[2:3, 0:1]                      # + bp (broadcast (1,1))

    # softmax over the sequence axis (PyTorch dim=1) -> lane-axis reduce.
    m = jnp.max(pv, axis=-1, keepdims=True)
    e = jnp.exp(pv - m)
    d = jnp.sum(e, axis=-1, keepdims=True)
    r = pl.reciprocal(d, approx=True)                # EUP slot (nearly free)
    r = r * (2.0 - d * r)                            # one Newton step -> ~f32 exact
    w = e * r                                        # (TB, S)

    attw_ref[...] = w.astype(attw_ref.dtype)

    # attention_vec = sum_S(inputs * attention_weight); f32 accumulate on VPU.
    xf = x.astype(jnp.float32)
    vec_ref[...] = jnp.sum(xf * w[:, :, None], axis=1).astype(vec_ref.dtype)


def _round_up(x, m):
    return ((x + m - 1) // m) * m


def _num_tensorcores():
    """Best-effort TensorCore-per-chip query; falls back to 1 (single TC)."""
    try:
        info = pltpu.get_tpu_info()
        for attr in ("num_cores", "cores_per_chip", "num_tensorcores",
                     "tensorcores_per_chip"):
            v = getattr(info, attr, None)
            if v is not None and int(v) > 0:
                return int(v)
    except Exception:
        pass
    return 1


def _pick_block(B, S, D, itemsize, num_cores):
    """Pick (tb, grid): tb is a multiple of 8, tb*S targets ~2048 MXU rows
    under a VMEM budget; grid is rounded to a multiple of num_cores when > 1
    so megacore 'parallel' sharding stays balanced."""
    row_target = 2048
    tb = max(8, (row_target // max(S, 1)) // 8 * 8)

    budget = 24 * 1024 * 1024            # stays under the 32 MiB scoped limit
    def vmem_bytes(t):
        return (2 * t * S * D * itemsize      # double-buffered input block
                + t * S * D * 4               # f32 qp intermediate
                + 2 * t * (D + S) * 4         # double-buffered output blocks
                + (D * D + 3 * D) * 4)        # resident weights
    while tb > 8 and vmem_bytes(tb) > budget:
        tb -= 8

    tb = min(tb, _round_up(B, 8))        # one block may cover the whole batch
    grid = pl.cdiv(B, tb)
    if num_cores > 1 and grid > 1 and grid % num_cores != 0:
        grid = _round_up(grid, num_cores)
        tb = _round_up(pl.cdiv(B, grid), 8)
        grid = pl.cdiv(B, tb)
        if grid > 1 and grid % num_cores != 0:
            grid = _round_up(grid, num_cores)   # last resort: pad extra blocks
    return tb, grid


def fusion_attention(inputs, wa, ba, wp, bp, *, block_b=None, num_cores=None):
    """inputs: (B, S, D); wa: (D, D) (in, out); ba: (D,); wp: (D, 1) or (D,);
    bp: scalar.  Returns (attention_vec (B, D), attention_weight (B, S, 1))."""
    B, S, D = inputs.shape
    cores = _num_tensorcores() if num_cores is None else num_cores
    if block_b is None:
        tb, grid = _pick_block(B, S, D, jnp.dtype(inputs.dtype).itemsize, cores)
    else:
        tb, grid = block_b, pl.cdiv(B, block_b)
    B_pad = tb * grid

    # Zero-pad ragged batches; padded rows stay finite and are sliced off.
    if B_pad != B:
        inputs_p = jnp.pad(inputs, ((0, B_pad - B), (0, 0), (0, 0)))
    else:
        inputs_p = inputs

    wa2 = jnp.asarray(wa, jnp.float32)
    # Pack the three tiny resident operands into one (3, D) array.
    aux = jnp.zeros((3, D), jnp.float32)
    aux = aux.at[0, :].set(jnp.asarray(ba, jnp.float32).reshape(D))
    aux = aux.at[1, :].set(jnp.asarray(wp, jnp.float32).reshape(D))
    aux = aux.at[2, 0].set(jnp.asarray(bp, jnp.float32).reshape(()))

    itemsize = jnp.dtype(inputs.dtype).itemsize
    cost = pl.CostEstimate(
        flops=2 * B_pad * S * D * D + 4 * B_pad * S * D,
        transcendentals=B_pad * S,
        bytes_accessed=(B_pad * S * D * itemsize          # inputs
                        + (D * D + 3 * D) * 4             # weights
                        + B_pad * (D + S) * itemsize),    # outputs
    )

    vec, attw = pl.pallas_call(
        _fusion_attention_kernel,
        out_shape=(
            jax.ShapeDtypeStruct((B_pad, D), inputs.dtype),   # attention_vec
            jax.ShapeDtypeStruct((B_pad, S), inputs.dtype),   # attention_weight
        ),
        grid_spec=pltpu.PrefetchScalarGridSpec(
            num_scalar_prefetch=0,
            grid=(grid,),
            in_specs=[
                pl.BlockSpec((tb, S, D), lambda b: (b, 0, 0)),  # inputs block
                pl.BlockSpec((D, D), lambda b: (0, 0)),         # wa (resident)
                pl.BlockSpec((3, D), lambda b: (0, 0)),         # ba/wp/bp packed
            ],
            out_specs=[
                pl.BlockSpec((tb, D), lambda b: (b, 0)),        # attention_vec
                pl.BlockSpec((tb, S), lambda b: (b, 0)),        # attention_weight
            ],
        ),
        compiler_params=pltpu.CompilerParams(
            dimension_semantics=("parallel",),    # batch blocks split over TCs
            vmem_limit_bytes=32 * 1024 * 1024,    # v5e scoped default is 16 MiB
        ),
        cost_estimate=cost,
    )(inputs_p, wa2, aux)

    # Drop batch padding; match the PyTorch attention_weight shape (B, S, 1).
    return vec[:B], attw[:B].reshape(B, S, 1)


def fusion_attention_ref(inputs, wa, ba, wp, bp):
    qp = inputs @ wa + ba
    qp = jnp.where(qp >= 0, qp, 0.01 * qp)
    pv = qp @ jnp.asarray(wp).reshape(-1, 1) + bp          # (B, S, 1)
    w = jax.nn.softmax(pv, axis=1)
    vec = jnp.sum(inputs * w, axis=1)
    return vec, w


if __name__ == "__main__":
    key = jax.random.PRNGKey(0)
    # Small shapes consistent with the module.
    B, S, D = 32, 8, 32
    k0, k1, k2, k3, k4 = jax.random.split(key, 5)

    inputs = jax.random.normal(k0, (B, S, D), dtype=jnp.float32)

    # nn.Linear(dim, dim) / nn.Linear(dim, 1) shapes, stored pre-transposed
    # as (in_features, out_features) for x @ W.
    bound = 1.0 / jnp.sqrt(D)
    wa = jax.random.uniform(k1, (D, D), jnp.float32, -bound, bound)
    ba = jax.random.uniform(k2, (D,),   jnp.float32, -bound, bound)
    wp = jax.random.uniform(k3, (D, 1), jnp.float32, -bound, bound)
    bp = jax.random.uniform(k4, (),     jnp.float32, -bound, bound)

    vec, attw = fusion_attention(inputs, wa, ba, wp, bp)
    jax.block_until_ready((vec, attw))

    vec_ref, attw_ref = fusion_attention_ref(inputs, wa, ba, wp, bp)
    assert vec.shape == (B, D) and attw.shape == (B, S, 1)
    assert jnp.allclose(vec, vec_ref, atol=1e-5, rtol=1e-5), "attention_vec mismatch"
    assert jnp.allclose(attw, attw_ref, atol=1e-5, rtol=1e-5), "attention_weight mismatch"

    print("KERNEL_OK")
</pallas_src>

<mosaic_0001>
module attributes {stable_mosaic.version = 11 : i64} {
  func.func @_fusion_attention_kernel(%arg0: i32, %arg1: memref<32x8x32xf32, #tpu.memory_space<vmem>>, %arg2: memref<32x32xf32, #tpu.memory_space<vmem>>, %arg3: memref<3x32xf32, #tpu.memory_space<vmem>>, %arg4: memref<32x32xf32, #tpu.memory_space<vmem>>, %arg5: memref<32x8xf32, #tpu.memory_space<vmem>>) attributes {dimension_semantics = [#tpu.dimension_semantics<parallel>], iteration_bounds = array<i64: 1>, scalar_prefetch = 0 : i64, scratch_operands = 0 : i64, tpu.core_type = #tpu.core_type<tc>, window_params = [{transform_indices = @transform_0, window_bounds = array<i64: 32, 8, 32>}, {pipeline_mode = #tpu.pipeline_mode<synchronous>, transform_indices = @transform_1, window_bounds = array<i64: 32, 32>}, {pipeline_mode = #tpu.pipeline_mode<synchronous>, transform_indices = @transform_2, window_bounds = array<i64: 3, 32>}, {transform_indices = @transform_3, window_bounds = array<i64: 32, 32>}, {transform_indices = @transform_4, window_bounds = array<i64: 32, 8>}]} {
    %c0 = arith.constant 0 : index
    %c0_0 = arith.constant 0 : index
    %c0_1 = arith.constant 0 : index
    %0 = vector.load %arg1[%c0, %c0_0, %c0_1] : memref<32x8x32xf32, #tpu.memory_space<vmem>>, vector<32x8x32xf32>
    %1 = vector.shape_cast %0 : vector<32x8x32xf32> to vector<256x32xf32>
    %c0_2 = arith.constant 0 : index
    %c0_3 = arith.constant 0 : index
    %2 = vector.load %arg2[%c0_2, %c0_3] : memref<32x32xf32, #tpu.memory_space<vmem>>, vector<32x32xf32>
    %cst = arith.constant dense<0.000000e+00> : vector<256x32xf32>
    %3 = tpu.matmul %1, %2, %cst {dimension_numbers = #tpu.dot_dimension_numbers<[1], [0], [0], [1], [0, 0, 1, 1], [], []>} : vector<256x32xf32>, vector<32x32xf32>, vector<256x32xf32> -> vector<256x32xf32>
    %c0_4 = arith.constant 0 : index
    %c0_5 = arith.constant 0 : index
    %4 = vector.load %arg3[%c0_4, %c0_5] : memref<3x32xf32, #tpu.memory_space<vmem>>, vector<1x32xf32>
    %5 = vector.broadcast %4 : vector<1x32xf32> to vector<256x32xf32>
    %6 = arith.addf %3, %5 : vector<256x32xf32>
    %cst_6 = arith.constant 0.00999999977 : f32
    %7 = vector.broadcast %cst_6 : f32 to vector<256x32xf32>
    %8 = arith.mulf %7, %6 : vector<256x32xf32>
    %9 = arith.maximumf %6, %8 : vector<256x32xf32>
    %10 = vector.shape_cast %9 : vector<256x32xf32> to vector<32x8x32xf32>
    %c1 = arith.constant 1 : index
    %c0_7 = arith.constant 0 : index
    %11 = vector.load %arg3[%c1, %c0_7] : memref<3x32xf32, #tpu.memory_space<vmem>>, vector<1x32xf32>
    %12 = vector.shape_cast %11 : vector<1x32xf32> to vector<1x1x32xf32>
    %13 = vector.broadcast %12 : vector<1x1x32xf32> to vector<32x8x32xf32>
    %14 = arith.mulf %10, %13 : vector<32x8x32xf32>
    %cst_8 = arith.constant dense<0.000000e+00> : vector<32x8xf32>
    %15 = vector.multi_reduction <add>, %14, %cst_8 [2] : vector<32x8x32xf32> to vector<32x8xf32>
    %c2 = arith.constant 2 : index
    %c0_9 = arith.constant 0 : index
    %16 = vector.load %arg3[%c2, %c0_9] : memref<3x32xf32, #tpu.memory_space<vmem>>, vector<1x1xf32>
    %17 = vector.broadcast %16 : vector<1x1xf32> to vector<32x8xf32>
    %18 = arith.addf %15, %17 : vector<32x8xf32>
    %cst_10 = arith.constant dense<0xFF800000> : vector<32xf32>
    %19 = vector.multi_reduction <maximumf>, %18, %cst_10 [1] : vector<32x8xf32> to vector<32xf32>
    %20 = vector.shape_cast %19 : vector<32xf32> to vector<32x1xf32>
    %21 = vector.broadcast %20 : vector<32x1xf32> to vector<32x8xf32>
    %22 = arith.subf %18, %21 : vector<32x8xf32>
    %23 = math.exp %22 : vector<32x8xf32>
    %cst_11 = arith.constant dense<0.000000e+00> : vector<32xf32>
    %24 = vector.multi_reduction <add>, %23, %cst_11 [1] : vector<32x8xf32> to vector<32xf32>
    %25 = vector.shape_cast %24 : vector<32xf32> to vector<32x1xf32>
    %26 = tpu.reciprocal %25 {approx = true} : vector<32x1xf32> -> vector<32x1xf32>
    %27 = arith.mulf %25, %26 : vector<32x1xf32>
    %cst_12 = arith.constant 2.000000e+00 : f32
    %28 = vector.broadcast %cst_12 : f32 to vector<32x1xf32>
    %29 = arith.subf %28, %27 : vector<32x1xf32>
    %30 = arith.mulf %26, %29 : vector<32x1xf32>
    %31 = vector.broadcast %30 : vector<32x1xf32> to vector<32x8xf32>
    %32 = arith.mulf %23, %31 : vector<32x8xf32>
    %c0_13 = arith.constant 0 : index
    %c0_14 = arith.constant 0 : index
    %33 = vector.load %arg5[%c0_13, %c0_14] : memref<32x8xf32, #tpu.memory_space<vmem>>, vector<32x8xf32>
    tpu.vector_store %arg5[%c0_13, %c0_14], %32 {strides = array<i32>} : memref<32x8xf32, #tpu.memory_space<vmem>>, vector<32x8xf32>,
    %34 = vector.shape_cast %32 : vector<32x8xf32> to vector<32x8x1xf32>
    %35 = vector.broadcast %34 : vector<32x8x1xf32> to vector<32x8x32xf32>
    %36 = arith.mulf %0, %35 : vector<32x8x32xf32>
    %cst_15 = arith.constant dense<0.000000e+00> : vector<32x32xf32>
    %37 = vector.multi_reduction <add>, %36, %cst_15 [1] : vector<32x8x32xf32> to vector<32x32xf32>
    %c0_16 = arith.constant 0 : index
    %c0_17 = arith.constant 0 : index
    %38 = vector.load %arg4[%c0_16, %c0_17] : memref<32x32xf32, #tpu.memory_space<vmem>>, vector<32x32xf32>
    tpu.vector_store %arg4[%c0_16, %c0_17], %37 {strides = array<i32>} : memref<32x32xf32, #tpu.memory_space<vmem>>, vector<32x32xf32>,
    return
  }
  func.func @transform_0(%arg0: i32) -> (i32, i32, i32) {
    %c0_i32 = arith.constant 0 : i32
    %c0_i32_0 = arith.constant 0 : i32
    %c0_i32_1 = arith.constant 0 : i32
    return %arg0, %c0_i32, %c0_i32_0 : i32, i32, i32
  }
  func.func @transform_1(%arg0: i32) -> (i32, i32) {
    %c0_i32 = arith.constant 0 : i32
    %c0_i32_0 = arith.constant 0 : i32
    %c0_i32_1 = arith.constant 0 : i32
    return %c0_i32, %c0_i32_0 : i32, i32
  }
  func.func @transform_2(%arg0: i32) -> (i32, i32) {
    %c0_i32 = arith.constant 0 : i32
    %c0_i32_0 = arith.constant 0 : i32
    %c0_i32_1 = arith.constant 0 : i32
    return %c0_i32, %c0_i32_0 : i32, i32
  }
  func.func @transform_3(%arg0: i32) -> (i32, i32) {
    %c0_i32 = arith.constant 0 : i32
    %c0_i32_0 = arith.constant 0 : i32
    return %arg0, %c0_i32 : i32, i32
  }
  func.func @transform_4(%arg0: i32) -> (i32, i32) {
    %c0_i32 = arith.constant 0 : i32
    %c0_i32_0 = arith.constant 0 : i32
    return %arg0, %c0_i32 : i32, i32
  }
}

</mosaic_0001>

<bundles_post_ra>
// kernel: tpu_custom_call.1
= control target key start
LH: loop header
LB: loop body
LE: loop exit
PB: predicated region body
PF: predicated region fallthrough
CT: control target
= control target key end

     0   :  { %10 = vsyncpa [#allocation3], 0  ;;  %s3680_s0 = inlined_call_operand.hbm [shape: f32[32,8,32], index: 0, kind: input, shape index: {}]   ;;  %s3681_s1 = inlined_call_operand.hbm [shape: f32[32,32], index: 1, kind: input, shape index: {}]   ;;  %s3682_s2 = inlined_call_operand.vmem [shape: f32[3,32], index: 2, kind: input, shape index: {}]   ;;  %s3683_s3 = inlined_call_operand.hbm [shape: f32[32,32], index: 3, kind: output, shape index: {0}]   ;;  %s3684_s4 = inlined_call_operand.vmem [shape: f32[32,8], index: 4, kind: output, shape index: {1}]  }
   0x1   :  { %11 = vsyncpa [#allocation6], 0 }
   0x2   :  { %12 = vsyncpa [#allocation4], 0  ;;  %s2622_s15 = smov [#allocation2]   ;;  %s2550_s19 = scalar_lea.hbm %s3680_s0, 4096 }
   0x3   :  { %s18_s16 = sshll.u32 %s2622_s15, 4  ;;  %p2551_p0 = scmp.ne.s32.totalorder %s3680_s0, %s2550_s19  ;;  %s19_s16 = int_to_ptr.vmem [resolvable:$true] %s18_s16 }
   0x4   :  { %p2554_p1 = scmp.lt.u32.totalorder %s2550_s19, %s3680_s0 }
   0x6   :  { %p2556_p2 = pnand %p2554_p1, %p2551_p0 }
   0x8   :  { %2559 = shalt.err (!%p2556_p2)
}
   0x9   :  { %s2560_s24 = scalar_lea.vmem %s19_s16, 4096  ;;  %p2565_p4 = scmp.lt.s32.totalorder %s19_s16, %s19_s16 }
   0xa   :  { %p2561_p3 = scmp.ne.s32.totalorder %s19_s16, %s2560_s24  ;;  %p2566_p5 = scmp.lt.s32.totalorder %s2560_s24, %s2560_s24 }
   0xc   :  { %p2567_p6 = por %p2566_p5, %p2565_p4 }
   0xe   :  { %p2568_p7 = pnand %p2567_p6, %p2561_p3 }
  0x10   :  { %2571 = shalt.err (!%p2568_p7)
}
  0x11   :  { %s2623_s25 = smov 128   ;;  %s2624_s26 = smov 8  }
  0x12   :  { %24 = dma.hbm_to_vmem [thread:$0]  %s3680_s0, 4096, %s19_s16, [#allocation3], %s2623_s25, %s2623_s25, %s2624_s26  }
  0x13   :  { %s2625_s29 = smov [#allocation5]   ;;  %s2572_s7 = scalar_lea.hbm %s3681_s1, 512 }
  0x14   :  { %s30_s30 = sshll.u32 %s2625_s29, 4  ;;  %p2573_p8 = scmp.ne.s32.totalorder %s3681_s1, %s2572_s7  ;;  %s31_s30 = int_to_ptr.vmem [resolvable:$true] %s30_s30 }
  0x15   :  { %p2576_p9 = scmp.lt.u32.totalorder %s2572_s7, %s3681_s1 }
  0x17   :  { %p2578_p10 = pnand %p2576_p9, %p2573_p8 }
  0x19   :  { %2581 = shalt.err (!%p2578_p10)
}
  0x1a   :  { %s2582_s12 = scalar_lea.vmem %s31_s30, 512  ;;  %p2587_p12 = scmp.lt.s32.totalorder %s31_s30, %s31_s30 }
  0x1b   :  { %p2583_p11 = scmp.ne.s32.totalorder %s31_s30, %s2582_s12  ;;  %p2588_p13 = scmp.lt.s32.totalorder %s2582_s12, %s2582_s12 }
  0x1d   :  { %p2589_p0 = por %p2588_p13, %p2587_p12 }
  0x1f   :  { %p2590_p1 = pnand %p2589_p0, %p2583_p11 }
  0x21   :  { %2593 = shalt.err (!%p2590_p1)
}
  0x22   :  { %36 = dma.hbm_to_vmem [thread:$0]  %s3681_s1, 512, %s31_s30, [#allocation6], %s2623_s25, %s2623_s25, %s2624_s26  }
  0x23   :  { %2616 = dma.done.wait [#allocation3], 4096  }
  0x24   :  { %2617 = vsyncadd [#allocation3], 4294963200 }
  0x25   :  { %2618 = dma.done.wait [#allocation6], 512  }
  0x26   :  { %2619 = vsyncadd [#allocation6], 4294966784  ;;  %vm86_vm0 = vcmask 261120   ;;  %v77_v0 = vld [vmem:[#allocation5] sm:$0xff]  ;;  %v78_v1 = vld [vmem:[#allocation5 + $0x8] sm:$0xff]  ;;  %vm804_vm1 = vcmask 1041409  }
  0x27   :  { %v79_v2 = vld [vmem:[#allocation5 + $0x10] sm:$0xff]  ;;  %v2424_v3 = vpack.c.bf16 %v78_v1, %v77_v0  ;;  %v80_v4 = vld [vmem:[#allocation5 + $0x18] sm:$0xff]  ;;  %v45_v5 = vld [vmem:[#allocation2] sm:$0xff]  ;;  %vm806_vm2 = vcmask 1042434   ;;  %vm808_vm3 = vcmask 1043459   ;;  %vm810_vm4 = vcmask 1044484  }
  0x28   :  { %v2428_v6 = vpack.c.bf16 %v80_v4, %v79_v2  ;;  %2376 = vmatprep.mubr.msk.f32.mxu0 %vm86_vm0, %v45_v5  ;;  %v61_v7 = vld [vmem:[#allocation2 + $0x80] sm:$0xff]  ;;  %v46_v8 = vld [vmem:[#allocation2 + $0x8] sm:$0xff]  ;;  %v47_v10 = vld [vmem:[#allocation2 + $0x10] sm:$0xff]  ;;  %vm812_vm5 = vcmask 1045509   ;;  %vm814_vm6 = vcmask 1046534   ;;  %vm816_vm7 = vcmask 1047559  }
  0x29   :  { %2425 = vmatprep.subr.bf16.mxu0 %v2424_v3  ;;  %2432 = vmatprep.subr.bf16.mxu1 %v2424_v3  ;;  %v62_v9 = vld [vmem:[#allocation2 + $0x88] sm:$0xff]  ;;  %v63_v11 = vld [vmem:[#allocation2 + $0x90] sm:$0xff]  ;;  %v48_v12 = vld [vmem:[#allocation2 + $0x18] sm:$0xff]  ;;  %vm843_vm8 = vcmask 64512  }
  0x2a   :  { %2427 = vmatpush3.bf16.msra.mxu0 %v2424_v3  ;;  %2434 = vmatpush3.bf16.msra.mxu1 %v2424_v3  ;;  %v64_v13 = vld [vmem:[#allocation2 + $0x98] sm:$0xff]  ;;  %v49_v14 = vld [vmem:[#allocation2 + $0x20] sm:$0xff]  ;;  %v50_v16 = vld [vmem:[#allocation2 + $0x28] sm:$0xff] }
  0x2b   :  { %2429 = vmatprep.subr.bf16.mxu0 %v2428_v6  ;;  %2433 = vmatprep.subr.bf16.mxu1 %v2428_v6  ;;  %v65_v15 = vld [vmem:[#allocation2 + $0xa0] sm:$0xff]  ;;  %v66_v17 = vld [vmem:[#allocation2 + $0xa8] sm:$0xff]  ;;  %v51_v18 = vld [vmem:[#allocation2 + $0x30] sm:$0xff] }
  0x2c   :  { %2400 = vmatprep.mubr.msk.f32.mxu1 %vm86_vm0, %v61_v7  ;;  %v67_v19 = vld [vmem:[#allocation2 + $0xb0] sm:$0xff]  ;;  %v52_v20 = vld [vmem:[#allocation2 + $0x38] sm:$0xff]  ;;  %v53_v22 = vld [vmem:[#allocation2 + $0x40] sm:$0xff] }
  0x2d   :  { %v68_v21 = vld [vmem:[#allocation2 + $0xb8] sm:$0xff]  ;;  %v69_v23 = vld [vmem:[#allocation2 + $0xc0] sm:$0xff]  ;;  %v54_v24 = vld [vmem:[#allocation2 + $0x48] sm:$0xff] }
  0x2e   :  { %2431 = vmatpush3.bf16.msra.mxu0 %v2428_v6  ;;  %2435 = vmatpush3.bf16.msra.mxu1 %v2428_v6  ;;  %v70_v25 = vld [vmem:[#allocation2 + $0xc8] sm:$0xff]  ;;  %v55_v26 = vld [vmem:[#allocation2 + $0x50] sm:$0xff]  ;;  %v56_v28 = vld [vmem:[#allocation2 + $0x58] sm:$0xff] }
  0x2f   :  { %v71_v27 = vld [vmem:[#allocation2 + $0xd0] sm:$0xff]  ;;  %v72_v29 = vld [vmem:[#allocation2 + $0xd8] sm:$0xff]  ;;  %v57_v30 = vld [vmem:[#allocation2 + $0x60] sm:$0xff] }
  0x30   :  { %v73_v31 = vld [vmem:[#allocation2 + $0xe0] sm:$0xff]  ;;  %v58_v32 = vld [vmem:[#allocation2 + $0x68] sm:$0xff]  ;;  %v59_v34 = vld [vmem:[#allocation2 + $0x70] sm:$0xff] }
  0x31   :  { %2377 = vmatmul.mubr.msk.f32.vlgmr.msra.gmra.mrb[0].mxu0 %vm86_vm0, %v46_v8  ;;  %2401 = vmatmul.mubr.msk.f32.vlgmr.msra.gmra.mrb[0].mxu1 %vm86_vm0, %v62_v9  ;;  %v74_v33 = vld [vmem:[#allocation2 + $0xe8] sm:$0xff]  ;;  %v75_v35 = vld [vmem:[#allocation2 + $0xf0] sm:$0xff]  ;;  %v60_v36 = vld [vmem:[#allocation2 + $0x78] sm:$0xff] }
  0x32   :  { %2379 = vmatprep.mubr.msk.f32.mxu0 %vm86_vm0, %v47_v10  ;;  %2403 = vmatprep.mubr.msk.f32.mxu1 %vm86_vm0, %v63_v11  ;;  %v76_v37 = vld [vmem:[#allocation2 + $0xf8] sm:$0xff]  ;;  %v605_v38 = vld [vmem:[%s3682_s2 + $0x2] sm:$0x1]  ;;  %v2721_v39 = vld [vmem:[%s3682_s2] ss:$0 sm:$0xff] }
  0x33   :  { %2436 = vpush %v605_v38  ;;  %v2730_v52 = vld [vmem:[%s3682_s2 + $0x1] ss:$0 sm:$0xff] }
  0x35   :  { %2380 = vmatmul.mubr.msk.f32.gmra.mrb[2].mxu0 %vm86_vm0, %v48_v12  ;;  %2404 = vmatmul.mubr.msk.f32.gmra.mrb[2].mxu1 %vm86_vm0, %v64_v13 }
  0x36   :  { %2382 = vmatprep.mubr.msk.f32.mxu0 %vm86_vm0, %v49_v14  ;;  %2406 = vmatprep.mubr.msk.f32.mxu1 %vm86_vm0, %v65_v15 }
  0x39   :  { %2383 = vmatmul.mubr.msk.f32.gmra.mrb[4].mxu0 %vm86_vm0, %v50_v16  ;;  %2407 = vmatmul.mubr.msk.f32.gmra.mrb[4].mxu1 %vm86_vm0, %v66_v17 }
  0x3a   :  { %2385 = vmatprep.mubr.msk.f32.mxu0 %vm86_vm0, %v51_v18  ;;  %2409 = vmatprep.mubr.msk.f32.mxu1 %vm86_vm0, %v67_v19 }
  0x3d   :  { %2386 = vmatmul.mubr.msk.f32.gmra.mrb[6].mxu0 %vm86_vm0, %v52_v20  ;;  %2410 = vmatmul.mubr.msk.f32.gmra.mrb[6].mxu1 %vm86_vm0, %v68_v21 }
  0x3e   :  { %2388 = vmatprep.mubr.msk.f32.mxu0 %vm86_vm0, %v53_v22  ;;  %2412 = vmatprep.mubr.msk.f32.mxu1 %vm86_vm0, %v69_v23 }
  0x41   :  { %2389 = vmatmul.mubr.msk.f32.gmra.mrb[8].mxu0 %vm86_vm0, %v54_v24  ;;  %2413 = vmatmul.mubr.msk.f32.gmra.mrb[8].mxu1 %vm86_vm0, %v70_v25 }
  0x42   :  { %2391 = vmatprep.mubr.msk.f32.mxu0 %vm86_vm0, %v55_v26  ;;  %2415 = vmatprep.mubr.msk.f32.mxu1 %vm86_vm0, %v71_v27 }
  0x45   :  { %2392 = vmatmul.mubr.msk.f32.gmra.mrb[10].mxu0 %vm86_vm0, %v56_v28  ;;  %2416 = vmatmul.mubr.msk.f32.gmra.mrb[10].mxu1 %vm86_vm0, %v72_v29 }
  0x46   :  { %2394 = vmatprep.mubr.msk.f32.mxu0 %vm86_vm0, %v57_v30  ;;  %2418 = vmatprep.mubr.msk.f32.mxu1 %vm86_vm0, %v73_v31 }
  0x49   :  { %2395 = vmatmul.mubr.msk.f32.gmra.mrb[12].mxu0 %vm86_vm0, %v58_v32  ;;  %2419 = vmatmul.mubr.msk.f32.gmra.mrb[12].mxu1 %vm86_vm0, %v74_v33 }
  0x4a   :  { %2397 = vmatprep.mubr.msk.f32.mxu0 %vm86_vm0, %v59_v34  ;;  %2421 = vmatprep.mubr.msk.f32.mxu1 %vm86_vm0, %v75_v35 }
  0x4d   :  { %2398 = vmatmul.mubr.msk.f32.gmra.mrb[14].mxu0 %vm86_vm0, %v60_v36  ;;  %2422 = vmatmul.mubr.msk.f32.gmra.mrb[14].mxu1 %vm86_vm0, %v76_v37 }
  0x64   :  { %s2437_s2 = spop %2436 }
 0x104   :  { %v2378_v40 = vpop.f32.mrb[0].mxu0  ;;  %v2402_v41 = vpop.f32.mrb[0].mxu1 }
 0x105   :  { %v255_v42 = vadd.f32 %v2378_v40, %v2721_v39  ;;  %v249_v43 = vpop.f32.mrb[1].mxu0  ;;  %v335_v44 = vadd.f32 %v2402_v41, %v2721_v39  ;;  %v329_v45 = vpop.f32.mrb[1].mxu1 }
 0x106   :  { %v250_v46 = vadd.f32 %v2721_v39, %v249_v43  ;;  %v330_v47 = vadd.f32 %v2721_v39, %v329_v45 }
 0x107   :  { %v409_v48 = vmul.f32 0.01, %v255_v42  ;;  %v425_v49 = vmul.f32 0.01, %v335_v44 }
 0x108   :  { %v408_v50 = vmul.f32 0.01, %v250_v46  ;;  %v2381_v51 = vpop.f32.mrb[2].mxu0  ;;  %v2405_v53 = vpop.f32.mrb[2].mxu1  ;;  %v424_v56 = vmul.f32 0.01, %v330_v47 }
 0x109   :  { %v441_v54 = vmax.f32 %v255_v42, %v409_v48  ;;  %v457_v55 = vmax.f32 %v335_v44, %v425_v49  ;;  %v265_v57 = vadd.f32 %v2381_v51, %v2721_v39  ;;  %v259_v58 = vpop.f32.mrb[3].mxu0  ;;  %v339_v59 = vpop.f32.mrb[3].mxu1  ;;  %v345_v0 = vadd.f32 %v2405_v53, %v2721_v39 }
 0x10a   :  { %v440_v60 = vmax.f32 %v250_v46, %v408_v50  ;;  %v456_v2 = vmax.f32 %v330_v47, %v424_v56  ;;  %v260_v9 = vadd.f32 %v2721_v39, %v259_v58  ;;  %v340_v18 = vadd.f32 %v2721_v39, %v339_v59 }
 0x10b   :  { %v478_v61 = vmul.f32 %v2730_v52, %v441_v54  ;;  %v494_v62 = vmul.f32 %v2730_v52, %v457_v55  ;;  %v411_v3 = vmul.f32 0.01, %v265_v57  ;;  %v427_v10 = vmul.f32 0.01, %v345_v0 }
 0x10c   :  { %v2384_v63 = vpop.f32.mrb[4].mxu0  ;;  %v2408_v1 = vpop.f32.mrb[4].mxu1  ;;  %v477_v6 = vmul.f32 %v2730_v52, %v440_v60  ;;  %v493_v16 = vmul.f32 %v2730_v52, %v456_v2  ;;  %v410_v19 = vmul.f32 0.01, %v260_v9  ;;  %v426_v30 = vmul.f32 0.01, %v340_v18 }
 0x10d   :  { %v512_v4 = vsel %vm86_vm0, %v478_v61, 0.0  ;;  %v2737_v5 = vpop.f32.mrb[5].mxu0  ;;  %v2740_v7 = vpop.f32.mrb[5].mxu1  ;;  %v560_v8 = vsel %vm86_vm0, %v494_v62, 0.0  ;;  %v443_v13 = vmax.f32 %v265_v57, %v411_v3  ;;  %v459_v20 = vmax.f32 %v345_v0, %v427_v10 }
 0x10e   :  { %513 = vadd.xlane.f32.xlu0 %v512_v4  ;;  %561 = vadd.xlane.f32.xlu1 %v560_v8  ;;  %v509_v14 = vsel %vm86_vm0, %v477_v6, 0.0  ;;  %v557_v24 = vsel %vm86_vm0, %v493_v16, 0.0  ;;  %v442_v33 = vmax.f32 %v260_v9, %v410_v19  ;;  %v275_v34 = vadd.f32 %v2384_v63, %v2721_v39 }
 0x10f   :  { %v480_v26 = vmul.f32 %v2730_v52, %v443_v13  ;;  %v496_v36 = vmul.f32 %v2730_v52, %v459_v20  ;;  %v458_v53 = vmax.f32 %v340_v18, %v426_v30  ;;  %v355_v56 = vadd.f32 %v2408_v1, %v2721_v39 }
 0x110   :  { %v2744_v11 = vpop.f32.mrb[6].mxu0  ;;  %v2746_v12 = vpop.f32.mrb[6].mxu1  ;;  %v413_v51 = vmul.f32 0.01, %v275_v34  ;;  %v479_v59 = vmul.f32 %v2730_v52, %v442_v33  ;;  %v270_v4 = vadd.f32 %v2721_v39, %v2737_v5 }
 0x111   :  { %v2749_v15 = vpop.f32.mrb[7].mxu0  ;;  %v2752_v17 = vpop.f32.mrb[7].mxu1  ;;  %v518_v42 = vsel %vm86_vm0, %v480_v26, 0.0  ;;  %v566_v58 = vsel %vm86_vm0, %v496_v36, 0.0  ;;  %v429_v9 = vmul.f32 0.01, %v355_v56  ;;  %v495_v13 = vmul.f32 %v2730_v52, %v458_v53 }
 0x112   :  { %510 = vadd.xlane.f32.xlu0 %v509_v14  ;;  %v445_v3 = vmax.f32 %v275_v34, %v413_v51  ;;  %v515_v10 = vsel %vm86_vm0, %v479_v59, 0.0 }
 0x113   :  { %v563_v26 = vsel %vm86_vm0, %v495_v13, 0.0 }
 0x114   :  { %v2390_v21 = vpop.f32.mrb[8].mxu0  ;;  %v2414_v22 = vpop.f32.mrb[8].mxu1 }
 0x115   :  { %v295_v23 = vadd.f32 %v2390_v21, %v2721_v39  ;;  %v375_v25 = vadd.f32 %v2414_v22, %v2721_v39  ;;  %v289_v27 = vpop.f32.mrb[9].mxu0  ;;  %v2759_v28 = vpop.f32.mrb[9].mxu1  ;;  %v412_v22 = vmul.f32 0.01, %v270_v4 }
 0x116   :  { %558 = vadd.xlane.f32.xlu0 %v557_v24  ;;  %v290_v29 = vadd.f32 %v2721_v39, %v289_v27  ;;  %v482_v24 = vmul.f32 %v2730_v52, %v445_v3 }
 0x117   :  { %v417_v31 = vmul.f32 0.01, %v295_v23  ;;  %v433_v32 = vmul.f32 0.01, %v375_v25  ;;  %v444_v34 = vmax.f32 %v270_v4, %v412_v22  ;;  %v370_v4 = vadd.f32 %v2721_v39, %v2759_v28 }
 0x118   :  { %v416_v35 = vmul.f32 0.01, %v290_v29  ;;  %v2393_v37 = vpop.f32.mrb[10].mxu0  ;;  %v2417_v38 = vpop.f32.mrb[10].mxu1  ;;  %v524_v36 = vsel %vm86_vm0, %v482_v24, 0.0 }
 0x119   :  { %v449_v40 = vmax.f32 %v295_v23, %v417_v31  ;;  %v465_v41 = vmax.f32 %v375_v25, %v433_v32  ;;  %v305_v43 = vadd.f32 %v2393_v37, %v2721_v39  ;;  %v299_v44 = vpop.f32.mrb[11].mxu0  ;;  %v379_v45 = vpop.f32.mrb[11].mxu1  ;;  %v385_v46 = vadd.f32 %v2417_v38, %v2721_v39 }
 0x11a   :  { %519 = vadd.xlane.f32.xlu0 %v518_v42  ;;  %v448_v47 = vmax.f32 %v290_v29, %v416_v35  ;;  %v300_v62 = vadd.f32 %v2721_v39, %v299_v44  ;;  %v380_v14 = vadd.f32 %v2721_v39, %v379_v45  ;;  %v350_v23 = vadd.f32 %v2721_v39, %v2740_v7 }
 0x11b   :  { %v486_v48 = vmul.f32 %v2730_v52, %v449_v40  ;;  %v419_v49 = vmul.f32 0.01, %v305_v43  ;;  %v502_v50 = vmul.f32 %v2730_v52, %v465_v41  ;;  %v435_v2 = vmul.f32 0.01, %v385_v46 }
 0x11c   :  { %v2396_v54 = vpop.f32.mrb[12].mxu0  ;;  %v2420_v55 = vpop.f32.mrb[12].mxu1  ;;  %v485_v1 = vmul.f32 %v2730_v52, %v448_v47  ;;  %v418_v18 = vmul.f32 0.01, %v300_v62  ;;  %v461_v25 = vmax.f32 %v355_v56, %v429_v9  ;;  %v434_v27 = vmul.f32 0.01, %v380_v14 }
 0x11d   :  { %v536_v57 = vsel %vm86_vm0, %v486_v48, 0.0  ;;  %v2773_v60 = vpop.f32.mrb[13].mxu0  ;;  %v2775_v61 = vpop.f32.mrb[13].mxu1  ;;  %v451_v63 = vmax.f32 %v305_v43, %v419_v49  ;;  %v584_v0 = vsel %vm86_vm0, %v502_v50, 0.0  ;;  %v467_v20 = vmax.f32 %v385_v46, %v435_v2 }
 0x11e   :  { %537 = vadd.xlane.f32.xlu1 %v536_v57  ;;  %567 = vadd.xlane.f32.xlu0 %v566_v58  ;;  %v533_v21 = vsel %vm86_vm0, %v485_v1, 0.0  ;;  %v450_v29 = vmax.f32 %v300_v62, %v418_v18  ;;  %v315_v32 = vadd.f32 %v2396_v54, %v2721_v39  ;;  %v280_v7 = vadd.f32 %v2721_v39, %v2749_v15 }
 0x11f   :  { %v488_v5 = vmul.f32 %v2730_v52, %v451_v63  ;;  %v504_v31 = vmul.f32 %v2730_v52, %v467_v20  ;;  %v428_v35 = vmul.f32 0.01, %v350_v23  ;;  %v466_v37 = vmax.f32 %v380_v14, %v434_v27 }
 0x120   :  { %v2782_v6 = vpop.f32.mrb[14].mxu0  ;;  %v2423_v8 = vpop.f32.mrb[14].mxu1  ;;  %v498_v38 = vmul.f32 %v2730_v52, %v461_v25  ;;  %v487_v42 = vmul.f32 %v2730_v52, %v450_v29  ;;  %v395_v43 = vadd.f32 %v2420_v55, %v2721_v39  ;;  %v421_v15 = vmul.f32 0.01, %v315_v32 }
 0x121   :  { %v319_v16 = vpop.f32.mrb[15].mxu0  ;;  %v399_v19 = vpop.f32.mrb[15].mxu1  ;;  %v542_v30 = vsel %vm86_vm0, %v488_v5, 0.0  ;;  %v405_v41 = vadd.f32 %v2423_v8, %v2721_v39  ;;  %v590_v45 = vsel %vm86_vm0, %v504_v31, 0.0  ;;  %v414_v48 = vmul.f32 0.01, %v280_v7 }
 0x122   :  { %585 = vadd.xlane.f32.xlu1 %v584_v0  ;;  %516 = vadd.xlane.f32.xlu0 %v515_v10  ;;  %v320_v33 = vadd.f32 %v2721_v39, %v319_v16  ;;  %v400_v44 = vadd.f32 %v2721_v39, %v399_v19  ;;  %v460_v49 = vmax.f32 %v350_v23, %v428_v35  ;;  %v572_v53 = vsel %vm86_vm0, %v498_v38, 0.0 }
 0x123   :  { %v439_v47 = vmul.f32 0.01, %v405_v41  ;;  %v360_v50 = vadd.f32 %v2721_v39, %v2752_v17  ;;  %v481_v54 = vmul.f32 %v2730_v52, %v444_v34  ;;  %v539_v57 = vsel %vm86_vm0, %v487_v42, 0.0 }
 0x124   :  { %v422_v40 = vmul.f32 0.01, %v320_v33  ;;  %v438_v51 = vmul.f32 0.01, %v400_v44  ;;  %v437_v58 = vmul.f32 0.01, %v395_v43  ;;  %v453_v62 = vmax.f32 %v315_v32, %v421_v15 }
 0x125   :  { %v471_v56 = vmax.f32 %v405_v41, %v439_v47  ;;  %v503_v63 = vmul.f32 %v2730_v52, %v466_v37  ;;  %v310_v17 = vadd.f32 %v2721_v39, %v2773_v60  ;;  %v430_v2 = vmul.f32 0.01, %v360_v50 }
 0x126   :  { %534 = vadd.xlane.f32.xlu1 %v533_v21  ;;  %564 = vadd.xlane.f32.xlu0 %v563_v26  ;;  %v454_v46 = vmax.f32 %v320_v33, %v422_v40  ;;  %v470_v59 = vmax.f32 %v400_v44, %v438_v51  ;;  %v446_v3 = vmax.f32 %v280_v7, %v414_v48  ;;  %v521_v8 = vsel %vm86_vm0, %v481_v54, 0.0 }
 0x127   :  { %v2818_v0 = vmul.f32 %v2730_v52, %v471_v56  ;;  %v497_v9 = vmul.f32 %v2730_v52, %v460_v49  ;;  %v390_v10 = vadd.f32 %v2721_v39, %v2775_v61  ;;  %v469_v60 = vmax.f32 %v395_v43, %v437_v58 }
 0x128   :  { %v2811_v55 = vmul.f32 %v2730_v52, %v454_v46  ;;  %v507_v1 = vmul.f32 %v2730_v52, %v470_v59  ;;  %v587_v13 = vsel %vm86_vm0, %v503_v63, 0.0  ;;  %v420_v14 = vmul.f32 0.01, %v310_v17 }
 0x129   :  { %v490_v16 = vmul.f32 %v2730_v52, %v453_v62  ;;  %v285_v18 = vadd.f32 %v2744_v11, %v2721_v39  ;;  %v462_v19 = vmax.f32 %v360_v50, %v430_v2  ;;  %v432_v28 = vmul.f32 0.01, %v370_v4 }
 0x12a   :  { %543 = vadd.xlane.f32.xlu1 %v542_v30  ;;  %525 = vadd.xlane.f32.xlu0 %v524_v36  ;;  %v569_v20 = vsel %vm86_vm0, %v497_v9, 0.0  ;;  %v483_v21 = vmul.f32 %v2730_v52, %v446_v3  ;;  %v436_v5 = vmul.f32 0.01, %v390_v10  ;;  %v452_v22 = vmax.f32 %v310_v17, %v420_v14 }
 0x12b   :  { %v548_v61 = vsel %vm86_vm0, %v490_v16, 0.0  ;;  %v506_v23 = vmul.f32 %v2730_v52, %v469_v60  ;;  %v325_v24 = vadd.f32 %v2782_v6, %v2721_v39  ;;  %v365_v11 = vadd.f32 %v2746_v12, %v2721_v39 }
 0x12c   :  { %v415_v25 = vmul.f32 0.01, %v285_v18  ;;  %v464_v26 = vmax.f32 %v370_v4, %v432_v28  ;;  %v527_v27 = vsel %vm86_vm0, %v483_v21, 0.0  ;;  %v499_v29 = vmul.f32 %v2730_v52, %v462_v19 }
 0x12d   :  { %v468_v30 = vmax.f32 %v390_v10, %v436_v5  ;;  %v596_v31 = vsel %vm86_vm0, %v506_v23, 0.0  ;;  %v423_v32 = vmul.f32 0.01, %v325_v24  ;;  %v489_v33 = vmul.f32 %v2730_v52, %v452_v22 }
 0x12e   :  { %591 = vadd.xlane.f32.xlu1 %v590_v45  ;;  %573 = vadd.xlane.f32.xlu0 %v572_v53  ;;  %v447_v34 = vmax.f32 %v285_v18, %v415_v25  ;;  %v431_v7 = vmul.f32 0.01, %v365_v11  ;;  %v575_v6 = vsel %vm86_vm0, %v499_v29, 0.0  ;;  %v501_v39 = vmul.f32 %v2730_v52, %v464_v26 }
 0x12f   :  { %v455_v12 = vmax.f32 %v325_v24, %v423_v32  ;;  %v545_v35 = vsel %vm86_vm0, %v489_v33, 0.0  ;;  %v505_v36 = vmul.f32 %v2730_v52, %v468_v30  ;;  %v551_v46 = vsel %vm86_vm0, %v2811_v55, 0.0 }
 0x130   :  { %v463_v37 = vmax.f32 %v365_v11, %v431_v7  ;;  %v581_v38 = vsel %vm86_vm0, %v501_v39, 0.0  ;;  %v484_v40 = vmul.f32 %v2730_v52, %v447_v34  ;;  %v599_v47 = vsel %vm86_vm0, %v507_v1, 0.0 }
 0x131   :  { %v593_v41 = vsel %vm86_vm0, %v505_v36, 0.0  ;;  %v492_v42 = vmul.f32 %v2730_v52, %v455_v12  ;;  %v602_v48 = vsel %vm86_vm0, %v2818_v0, 0.0  ;;  %v674_v1 = vlaneseq }
 0x132   :  { %540 = vadd.xlane.f32.xlu1 %v539_v57  ;;  %522 = vadd.xlane.f32.xlu0 %v521_v8  ;;  %v530_v43 = vsel %vm86_vm0, %v484_v40, 0.0  ;;  %v500_v44 = vmul.f32 %v2730_v52, %v463_v37  ;;  %v2868_v60 = vstv %s2437_s2 }
 0x133   :  { %v554_v45 = vsel %vm86_vm0, %v492_v42, 0.0  ;;  %v675_v4 = vand.u32 127, %v674_v1  ;;  %v2864_v8 = vshrl.u32 %v674_v1, 7 }
 0x134   :  { %v578_v15 = vsel %vm86_vm0, %v500_v44, 0.0 }
 0x135   :  { %v2877_v16 = vsub.s32 %v675_v4, %v2864_v8 }
 0x136   :  { %588 = vadd.xlane.f32.xlu1 %v587_v13  ;;  %570 = vadd.xlane.f32.xlu0 %v569_v20 }
 0x13a   :  { %549 = vadd.xlane.f32.xlu1 %v548_v61  ;;  %528 = vadd.xlane.f32.xlu0 %v527_v27 }
 0x13e   :  { %597 = vadd.xlane.f32.xlu1 %v596_v31  ;;  %576 = vadd.xlane.f32.xlu0 %v575_v6 }
 0x142   :  { %546 = vadd.xlane.f32.xlu1 %v545_v35  ;;  %582 = vadd.xlane.f32.xlu0 %v581_v38 }
 0x146   :  { %594 = vadd.xlane.f32.xlu1 %v593_v41  ;;  %531 = vadd.xlane.f32.xlu0 %v530_v43 }
 0x14a   :  { %555 = vadd.xlane.f32.xlu1 %v554_v45  ;;  %579 = vadd.xlane.f32.xlu0 %v578_v15 }
 0x14e   :  { %552 = vadd.xlane.f32.xlu1 %v551_v46 }
 0x152   :  { %600 = vadd.xlane.f32.xlu1 %v599_v47 }
 0x156   :  { %603 = vadd.xlane.f32.xlu1 %v602_v48 }
 0x19b   :  { %v514_v52 = vpop.xlane.xlu0 %513  ;;  %v562_v51 = vpop.xlane.xlu1 %561 }
 0x19c   :  { %v2880_v18 = vadd.f32 %v2868_v60, %v514_v52  ;;  %v2890_v5 = vadd.f32 %v2868_v60, %v562_v51 }
 0x19e   :  { %v683_v11 = vrot.slane %v2880_v18, %v2877_v16  ;;  %v747_v32 = vrot.slane %v2890_v5, %v2877_v16 }
 0x19f   :  { %v511_v49 = vpop.xlane.xlu0 %510 }
 0x1a0   :  { %v2871_v13 = vadd.f32 %v2868_v60, %v511_v49 }
 0x1a2   :  { %v679_v21 = vrot.slane %v2871_v13, %v2877_v16 }
 0x1a3   :  { %v559_v50 = vpop.xlane.xlu0 %558 }
 0x1a4   :  { %v2885_v20 = vadd.f32 %v2868_v60, %v559_v50  ;;  %v805_v31 = vsel %vm804_vm1, %v683_v11, %v679_v21 }
 0x1a6   :  { %v743_v30 = vrot.slane %v2885_v20, %v2877_v16 }
 0x1a7   :  { %v520_v53 = vpop.xlane.xlu0 %519 }
 0x1a8   :  { %v2906_v25 = vadd.f32 %v2868_v60, %v520_v53  ;;  %v825_v42 = vsel %vm804_vm1, %v747_v32, %v743_v30 }
 0x1aa   :  { %v691_v35 = vrot.slane %v2906_v25, %v2877_v16 }
 0x1ab   :  { %v538_v54 = vpop.xlane.xlu1 %537  ;;  %v568_v56 = vpop.xlane.xlu0 %567 }
 0x1ac   :  { %v2893_v22 = vadd.f32 %v2868_v60, %v538_v54  ;;  %v2921_v34 = vadd.f32 %v2868_v60, %v568_v56 }
 0x1ae   :  { %v715_v33 = vrot.slane %v2893_v22, %v2877_v16  ;;  %v755_v44 = vrot.slane %v2921_v34, %v2877_v16 }
 0x1af   :  { %v586_v57 = vpop.xlane.xlu1 %585  ;;  %v517_v58 = vpop.xlane.xlu0 %516 }
 0x1b0   :  { %v2874_v14 = vadd.f32 %v2868_v60, %v517_v58  ;;  %v2948_v45 = vadd.f32 %v2868_v60, %v586_v57 }
 0x1b2   :  { %v687_v61 = vrot.slane %v2874_v14, %v2877_v16 }
 0x1b3   :  { %v535_v59 = vpop.xlane.xlu1 %534  ;;  %v565_v62 = vpop.xlane.xlu0 %564 }
 0x1b4   :  { %v2898_v23 = vadd.f32 %v2868_v60, %v535_v59  ;;  %v2901_v24 = vadd.f32 %v2868_v60, %v565_v62  ;;  %v807_v7 = vsel %vm806_vm2, %v687_v61, %v805_v31 }
 0x1b5   :  { %v809_v46 = vsel %vm808_vm3, %v691_v35, %v807_v7 }
 0x1b6   :  { %v711_v6 = vrot.slane %v2898_v23, %v2877_v16  ;;  %v751_v39 = vrot.slane %v2901_v24, %v2877_v16 }
 0x1b7   :  { %v544_v55 = vpop.xlane.xlu1 %543  ;;  %v526_v63 = vpop.xlane.xlu0 %525 }
 0x1b8   :  { %v2943_v43 = vadd.f32 %v2868_v60, %v526_v63  ;;  %v2951_v15 = vadd.f32 %v2868_v60, %v544_v55  ;;  %v818_v47 = vsel %vm804_vm1, %v715_v33, %v711_v6  ;;  %v826_v48 = vsel %vm806_vm2, %v751_v39, %v825_v42 }
 0x1b9   :  { %v779_v63 = vrot.slane %v2948_v45, %v2877_v16 }
 0x1ba   :  { %v699_v58 = vrot.slane %v2943_v43, %v2877_v16  ;;  %v723_v1 = vrot.slane %v2951_v15, %v2877_v16 }
 0x1bb   :  { %v2860_v17 = vpop.xlane.xlu1 %591  ;;  %v2862_v2 = vpop.xlane.xlu0 %573 }
 0x1bc   :  { %v2973_v59 = vadd.f32 %v2868_v60, %v2862_v2  ;;  %v3010_v7 = vadd.f32 %v2868_v60, %v2860_v17 }
 0x1be   :  { %v763_v31 = vrot.slane %v2973_v59, %v2877_v16 }
 0x1bf   :  { %v541_v0 = vpop.xlane.xlu1 %540  ;;  %v523_v3 = vpop.xlane.xlu0 %522 }
 0x1c0   :  { %v2909_v26 = vadd.f32 %v2868_v60, %v523_v3  ;;  %v2929_v12 = vadd.f32 %v2868_v60, %v541_v0  ;;  %v827_v0 = vsel %vm808_vm3, %v755_v44, %v826_v48 }
 0x1c2   :  { %v695_v36 = vrot.slane %v2909_v26, %v2877_v16  ;;  %v719_v52 = vrot.slane %v2929_v12, %v2877_v16 }
 0x1c3   :  { %v2866_v9 = vpop.xlane.xlu1 %588  ;;  %v571_v10 = vpop.xlane.xlu0 %570 }
 0x1c4   :  { %v2936_v37 = vadd.f32 %v2868_v60, %v571_v10  ;;  %v811_v50 = vsel %vm810_vm4, %v695_v36, %v809_v46  ;;  %v819_v3 = vsel %vm806_vm2, %v719_v52, %v818_v47 }
 0x1c5   :  { %v813_v10 = vsel %vm812_vm5, %v699_v58, %v811_v50  ;;  %v820_v35 = vsel %vm808_vm3, %v723_v1, %v819_v3 }
 0x1c6   :  { %v759_v51 = vrot.slane %v2936_v37, %v2877_v16 }
 0x1c7   :  { %v2882_v19 = vpop.xlane.xlu1 %549  ;;  %v529_v28 = vpop.xlane.xlu0 %528 }
 0x1c8   :  { %v2939_v38 = vadd.f32 %v2868_v60, %v529_v28  ;;  %v2994_v28 = vadd.f32 %v2868_v60, %v2866_v9  ;;  %v828_v21 = vsel %vm810_vm4, %v759_v51, %v827_v0  ;;  %v3014_v6 = vadd.f32 %v2868_v60, %v2882_v19 }
 0x1ca   :  { %v703_v53 = vrot.slane %v2939_v38, %v2877_v16  ;;  %v783_v17 = vrot.slane %v2994_v28, %v2877_v16  ;;  %v731_v50 = vrot.slane %v3014_v6, %v2877_v16 }
 0x1cb   :  { %v2911_v27 = vpop.xlane.xlu1 %597  ;;  %v577_v29 = vpop.xlane.xlu0 %576 }
 0x1cc   :  { %v2967_v54 = vadd.f32 %v2868_v60, %v577_v29  ;;  %v815_v30 = vsel %vm814_vm6, %v703_v53, %v813_v10  ;;  %v3051_v3 = vadd.f32 %v2868_v60, %v2911_v27 }
 0x1ce   :  { %v767_v61 = vrot.slane %v2967_v54, %v2877_v16  ;;  %v795_v27 = vrot.slane %v3051_v3, %v2877_v16 }
 0x1cf   :  { %v547_v40 = vpop.xlane.xlu1 %546  ;;  %v583_v41 = vpop.xlane.xlu0 %582 }
 0x1d0   :  { %v2959_v49 = vadd.f32 %v2868_v60, %v583_v41  ;;  %v2976_v62 = vadd.f32 %v2868_v60, %v547_v40  ;;  %v829_v41 = vsel %vm812_vm5, %v763_v31, %v828_v21 }
 0x1d1   :  { %v830_v46 = vsel %vm814_vm6, %v767_v61, %v829_v41  ;;  %v3075_v41 = vsub.s32 0, %v2864_v8 }
 0x1d2   :  { %v775_v2 = vrot.slane %v2959_v49, %v2877_v16  ;;  %v727_v32 = vrot.slane %v2976_v62, %v2877_v16 }
 0x1d3   :  { %v595_v56 = vpop.xlane.xlu1 %594  ;;  %v532_v57 = vpop.xlane.xlu0 %531 }
 0x1d4   :  { %v2979_v55 = vadd.f32 %v2868_v60, %v532_v57  ;;  %v832_v36 = vsel %vm804_vm1, %v779_v63, %v775_v2  ;;  %v3025_v42 = vadd.f32 %v2868_v60, %v595_v56  ;;  %v821_v47 = vsel %vm810_vm4, %v727_v32, %v820_v35 }
 0x1d5   :  { %v833_v51 = vsel %vm806_vm2, %v783_v17, %v832_v36  ;;  %v787_v56 = vrot.slane %v3010_v7, %v2877_v16  ;;  %v822_v0 = vsel %vm812_vm5, %v731_v50, %v821_v47  ;;  %v3081_v17 = vsub.s32 2, %v2864_v8 }
 0x1d6   :  { %v707_v4 = vrot.slane %v2979_v55, %v2877_v16  ;;  %v791_v58 = vrot.slane %v3025_v42, %v2877_v16 }
 0x1d7   :  { %v556_v11 = vpop.xlane.xlu1 %555  ;;  %v580_v29 = vpop.xlane.xlu0 %579  ;;  %v834_v2 = vsel %vm808_vm3, %v787_v56, %v833_v51  ;;  %v3090_v51 = vsub.s32 4, %v2864_v8 }
 0x1d8   :  { %v3005_v33 = vadd.f32 %v2868_v60, %v580_v29  ;;  %v817_v9 = vsel %vm816_vm7, %v707_v4, %v815_v30  ;;  %v3028_v19 = vadd.f32 %v2868_v60, %v556_v11  ;;  %v835_v11 = vsel %vm810_vm4, %v791_v58, %v834_v2 }
 0x1d9   :  { %v844_v39 = vsel %vm843_vm8, %v817_v9, -inf  ;;  %v836_v9 = vsel %vm812_vm5, %v795_v27, %v835_v11  ;;  %v3109_v11 = vsub.s32 6, %v2864_v8 }
 0x1da   :  { %v771_v40 = vrot.slane %v3005_v33, %v2877_v16  ;;  %845 = vmax.xlane.f32.xlu0 %v844_v39  ;;  %v739_v63 = vrot.slane %v3028_v19, %v2877_v16 }
 0x1db   :  { %v553_v44 = vpop.xlane.xlu1 %552 }
 0x1dc   :  { %v3033_v48 = vadd.f32 %v2868_v60, %v553_v44  ;;  %v831_v52 = vsel %vm816_vm7, %v771_v40, %v830_v46  ;;  %v2626_v40 = vmov 0   ;;  %v3084_v44 = vsub.s32 3, %v2864_v8 }
 0x1dd   :  { %v850_v53 = vsel %vm843_vm8, %v831_v52, -inf  ;;  %2445 = vset.pattern.permute.xlu1 %v2626_v40  ;;  %2444 = vset.pattern.permute.xlu0 %v2626_v40 }
 0x1de   :  { %v735_v57 = vrot.slane %v3033_v48, %v2877_v16  ;;  %851 = vmax.xlane.f32.xlu0 %v850_v53 }
 0x1df   :  { %v601_v1 = vpop.xlane.xlu1 %600 }
 0x1e0   :  { %v3055_v4 = vadd.f32 %v2868_v60, %v601_v1  ;;  %v823_v10 = vsel %vm814_vm6, %v735_v57, %v822_v0 }
 0x1e1   :  { %v824_v21 = vsel %vm816_vm7, %v739_v63, %v823_v10  ;;  %v3101_v10 = vsub.s32 5, %v2864_v8 }
 0x1e2   :  { %v847_v61 = vsel %vm843_vm8, %v824_v21, -inf  ;;  %v799_v29 = vrot.slane %v3055_v4, %v2877_v16 }
 0x1e3   :  { %848 = vmax.xlane.f32.xlu1 %v847_v61  ;;  %v604_v30 = vpop.xlane.xlu1 %603 }
 0x1e4   :  { %v3066_v31 = vadd.f32 %v2868_v60, %v604_v30  ;;  %v837_v39 = vsel %vm814_vm6, %v799_v29, %v836_v9  ;;  %v3078_v60 = vsub.s32 1, %v2864_v8 }
 0x1e6   :  { %v803_v32 = vrot.slane %v3066_v31, %v2877_v16 }
 0x1e8   :  { %v838_v35 = vsel %vm816_vm7, %v803_v32, %v837_v39  ;;  %v3117_v39 = vsub.s32 7, %v2864_v8 }
 0x1e9   :  { %v853_v36 = vsel %vm843_vm8, %v838_v35, -inf }
 0x1ea   :  { %854 = vmax.xlane.f32.xlu1 %v853_v36 }
 0x267   :  { %v846_v46 = vpop.xlane.xlu0 %845 }
 0x268   :  { %v863_v47 = vrot.slane %v846_v46, %v3075_v41  ;;  %v867_v52 = vrot.slane %v846_v46, %v3078_v60  ;;  %v871_v50 = vrot.slane %v846_v46, %v3081_v17  ;;  %v875_v53 = vrot.slane %v846_v46, %v3084_v44 }
 0x269   :  { %v879_v21 = vrot.slane %v846_v46, %v3090_v51  ;;  %v883_v29 = vrot.slane %v846_v46, %v3101_v10  ;;  %v891_v8 = vrot.slane %v846_v46, %v3117_v39 }
 0x26a   :  { %v1020_v56 = vsub.f32 %v2871_v13, %v863_v47  ;;  %v1021_v57 = vsub.f32 %v2880_v18, %v867_v52  ;;  %v1022_v58 = vsub.f32 %v2874_v14, %v871_v50  ;;  %v1023_v61 = vsub.f32 %v2906_v25, %v875_v53 }
 0x26b   :  { %v3096_v63 = vpop.xlane.xlu0 %851  ;;  %v1024_v30 = vsub.f32 %v2909_v26, %v879_v21  ;;  %v1025_v35 = vsub.f32 %v2943_v43, %v883_v29 }
 0x26c   :  { %v1052_v1 = vmul.f32 1.442695, %v1020_v56  ;;  %v1054_v0 = vmul.f32 1.442695, %v1021_v57  ;;  %v931_v2 = vrot.slane %v3096_v63, %v3078_v60  ;;  %v1056_v13 = vmul.f32 1.442695, %v1022_v58 }
 0x26d   :  { %v935_v14 = vrot.slane %v3096_v63, %v3081_v17  ;;  %v1058_v27 = vmul.f32 1.442695, %v1023_v61  ;;  %v943_v25 = vrot.slane %v3096_v63, %v3090_v51  ;;  %v1060_v36 = vmul.f32 1.442695, %v1024_v30 }
 0x26e   :  { %2446 = vpow2.f32 %v1052_v1  ;;  %v1037_v18 = vsub.f32 %v2890_v5, %v931_v2  ;;  %v887_v5 = vrot.slane %v846_v46, %v3109_v11  ;;  %v951_v26 = vrot.slane %v3096_v63, %v3109_v11 }
 0x26f   :  { %2448 = vpow2.f32 %v1054_v0  ;;  %v1038_v32 = vsub.f32 %v2901_v24, %v935_v14  ;;  %v1040_v40 = vsub.f32 %v2936_v37, %v943_v25  ;;  %v1062_v53 = vmul.f32 1.442695, %v1025_v35 }
 0x270   :  { %2450 = vpow2.f32 %v1056_v13  ;;  %v1086_v9 = vmul.f32 1.442695, %v1037_v18  ;;  %v3126_v24 = vpop.xlane.xlu1 %848  ;;  %v1026_v43 = vsub.f32 %v2939_v38, %v887_v5  ;;  %v1042_v37 = vsub.f32 %v2967_v54, %v951_v26 }
 0x271   :  { %2452 = vpow2.f32 %v1058_v27  ;;  %v1088_v47 = vmul.f32 1.442695, %v1038_v32  ;;  %v1092_v56 = vmul.f32 1.442695, %v1040_v40  ;;  %v899_v57 = vrot.slane %v3126_v24, %v3078_v60 }
 0x272   :  { %2454 = vpow2.f32 %v1086_v9  ;;  %v1027_v0 = vsub.f32 %v2979_v55, %v891_v8  ;;  %v1064_v46 = vmul.f32 1.442695, %v1026_v43  ;;  %v927_v38 = vrot.slane %v3096_v63, %v3075_v41 }
 0x273   :  { %2456 = vpow2.f32 %v1060_v36  ;;  %v1096_v54 = vmul.f32 1.442695, %v1042_v37  ;;  %v1029_v2 = vsub.f32 %v2893_v22, %v899_v57  ;;  %v939_v14 = vrot.slane %v3096_v63, %v3084_v44 }
 0x274   :  { %2458 = vpow2.f32 %v1088_v47  ;;  %v1066_v55 = vmul.f32 1.442695, %v1027_v0  ;;  %v1036_v18 = vsub.f32 %v2885_v20, %v927_v38  ;;  %v907_v22 = vrot.slane %v3126_v24, %v3084_v44 }
 0x275   :  { %2460 = vpow2.f32 %v1062_v53  ;;  %v1070_v29 = vmul.f32 1.442695, %v1029_v2  ;;  %v947_v32 = vrot.slane %v3096_v63, %v3101_v10  ;;  %v1039_v20 = vsub.f32 %v2921_v34, %v939_v14 }
 0x276   :  { %2462 = vpow2.f32 %v1092_v56  ;;  %v1084_v9 = vmul.f32 1.442695, %v1036_v18  ;;  %v1031_v5 = vsub.f32 %v2951_v15, %v907_v22  ;;  %v895_v47 = vrot.slane %v3126_v24, %v3075_v41 }
 0x277   :  { %v3137_v58 = vpop.xlane.xlu1 %854  ;;  %2464 = vpow2.f32 %v1064_v46  ;;  %v1041_v40 = vsub.f32 %v2973_v59, %v947_v32  ;;  %v1090_v34 = vmul.f32 1.442695, %v1039_v20  ;;  %v915_v15 = vrot.slane %v3126_v24, %v3101_v10 }
 0x278   :  { %v3124_v52 = vpop.eup %2446  ;;  %v963_v21 = vrot.slane %v3137_v58, %v3078_v60  ;;  %2466 = vpow2.f32 %v1096_v54  ;;  %v1074_v8 = vmul.f32 1.442695, %v1031_v5  ;;  %v1028_v56 = vsub.f32 %v2898_v23, %v895_v47 }
 0x279   :  { %v3128_v50 = vpop.eup %2448  ;;  %1149 = vperm.xlu0 %2444, %v3124_v52   ;;  %2468 = vpow2.f32 %v1066_v55  ;;  %v1094_v59 = vmul.f32 1.442695, %v1041_v40  ;;  %v959_v57 = vrot.slane %v3137_v58, %v3075_v41  ;;  %v1033_v0 = vsub.f32 %v3014_v6, %v915_v15 }
 0x27a   :  { %1152 = vperm.xlu1 %2445, %v3128_v50   ;;  %v3139_v1 = vpop.eup %2450  ;;  %v1045_v30 = vsub.f32 %v2948_v45, %v963_v21  ;;  %2470 = vpow2.f32 %v1070_v29  ;;  %v971_v45 = vrot.slane %v3137_v58, %v3084_v44  ;;  %v903_v23 = vrot.slane %v3126_v24, %v3081_v17 }
 0x27b   :  { %v3148_v61 = vpop.eup %2452  ;;  %2472 = vpow2.f32 %v1084_v9  ;;  %v1068_v2 = vmul.f32 1.442695, %v1028_v56  ;;  %v1044_v21 = vsub.f32 %v2959_v49, %v959_v57  ;;  %v923_v6 = vrot.slane %v3126_v24, %v3117_v39 }
 0x27c   :  { %v3150_v13 = vpop.eup %2454  ;;  %v1102_v35 = vmul.f32 1.442695, %v1045_v30  ;;  %v1047_v43 = vsub.f32 %v3010_v7, %v971_v45  ;;  %v979_v7 = vrot.slane %v3137_v58, %v3101_v10  ;;  %v1078_v55 = vmul.f32 1.442695, %v1033_v0 }
 0x27d   :  { %1200 = vperm.xlu0 %2444, %v3150_v13   ;;  %v3160_v27 = vpop.eup %2456  ;;  %v1030_v29 = vsub.f32 %v2929_v12, %v903_v23  ;;  %v967_v49 = vrot.slane %v3137_v58, %v3081_v17  ;;  %v1100_v30 = vmul.f32 1.442695, %v1044_v21  ;;  %v1035_v32 = vsub.f32 %v3028_v19, %v923_v6 }
 0x27e   :  { %1155 = vperm.xlu1 %2445, %v3139_v1   ;;  %v3162_v25 = vpop.eup %2458  ;;  %2474 = vpow2.f32 %v1102_v35  ;;  %v1106_v46 = vmul.f32 1.442695, %v1047_v43  ;;  %v1049_v14 = vsub.f32 %v3051_v3, %v979_v7  ;;  %v987_v3 = vrot.slane %v3137_v58, %v3117_v39 }
 0x27f   :  { %v3172_v36 = vpop.eup %2460  ;;  %2476 = vpow2.f32 %v1090_v34  ;;  %v1072_v12 = vmul.f32 1.442695, %v1030_v29  ;;  %v1046_v45 = vsub.f32 %v2994_v28, %v967_v49  ;;  %v911_v19 = vrot.slane %v3126_v24, %v3090_v51 }
 0x280   :  { %v3174_v26 = vpop.eup %2462  ;;  %2478 = vpow2.f32 %v1074_v8  ;;  %v1110_v20 = vmul.f32 1.442695, %v1049_v14  ;;  %v1082_v35 = vmul.f32 1.442695, %v1035_v32  ;;  %v1051_v40 = vsub.f32 %v3066_v31, %v987_v3 }
 0x281   :  { %1203 = vperm.xlu0 %2444, %v3162_v25   ;;  %v3184_v53 = vpop.eup %2464  ;;  %2480 = vpow2.f32 %v1094_v59  ;;  %v1104_v15 = vmul.f32 1.442695, %v1046_v45  ;;  %v1032_v28 = vsub.f32 %v2976_v62, %v911_v19  ;;  %v975_v8 = vrot.slane %v3137_v58, %v3090_v51 }
 0x282   :  { %1158 = vperm.xlu1 %2445, %v3148_v61   ;;  %v3186_v37 = vpop.eup %2466  ;;  %2482 = vpow2.f32 %v1106_v46  ;;  %v1114_v43 = vmul.f32 1.442695, %v1051_v40  ;;  %v919_v56 = vrot.slane %v3126_v24, %v3109_v11  ;;  %v983_v23 = vrot.slane %v3137_v58, %v3109_v11 }
 0x283   :  { %v3196_v38 = vpop.eup %2468  ;;  %2484 = vpow2.f32 %v1068_v2  ;;  %v1076_v57 = vmul.f32 1.442695, %v1032_v28  ;;  %v1048_v62 = vsub.f32 %v3025_v42, %v975_v8  ;;  %v955_v42 = vrot.slane %v3096_v63, %v3117_v39 }
 0x284   :  { %v3198_v54 = vpop.eup %2470  ;;  %2486 = vpow2.f32 %v1078_v55  ;;  %v1034_v46 = vsub.f32 %v3033_v48, %v919_v56  ;;  %v1050_v55 = vsub.f32 %v3055_v4, %v983_v23 }
 0x285   :  { %1209 = vperm.xlu0 %2444, %v3174_v26   ;;  %v3208_v18 = vpop.eup %2472  ;;  %2488 = vpow2.f32 %v1100_v30  ;;  %v1108_v2 = vmul.f32 1.442695, %v1048_v62  ;;  %v1043_v58 = vsub.f32 %v3005_v33, %v955_v42 }
 0x286   :  { %1161 = vperm.xlu1 %2445, %v3160_v27   ;;  %2490 = vpow2.f32 %v1110_v20  ;;  %v1080_v6 = vmul.f32 1.442695, %v1034_v46  ;;  %v1112_v29 = vmul.f32 1.442695, %v1050_v55 }
 0x287   :  { %2492 = vpow2.f32 %v1072_v12  ;;  %v1098_v63 = vmul.f32 1.442695, %v1043_v58 }
 0x288   :  { %v3210_v22 = vpop.eup %2474  ;;  %2494 = vpow2.f32 %v1082_v35 }
 0x289   :  { %1215 = vperm.xlu0 %2444, %v3186_v37   ;;  %v3220_v9 = vpop.eup %2476  ;;  %2496 = vpow2.f32 %v1104_v15 }
 0x28a   :  { %1164 = vperm.xlu1 %2445, %v3172_v36   ;;  %v3222_v5 = vpop.eup %2478  ;;  %2498 = vpow2.f32 %v1114_v43 }
 0x28b   :  { %v3230_v34 = vpop.eup %2480  ;;  %2500 = vpow2.f32 %v1076_v57 }
 0x28c   :  { %v3232_v47 = vpop.eup %2482  ;;  %2502 = vpow2.f32 %v1108_v2 }
 0x28d   :  { %1176 = vperm.xlu0 %2444, %v3198_v54   ;;  %v3239_v59 = vpop.eup %2484  ;;  %2504 = vpow2.f32 %v1080_v6 }
 0x28e   :  { %1167 = vperm.xlu1 %2445, %v3184_v53   ;;  %v3241_v31 = vpop.eup %2486  ;;  %2506 = vpow2.f32 %v1112_v29 }
 0x28f   :  { %v3248_v0 = vpop.eup %2488  ;;  %2508 = vpow2.f32 %v1098_v63 }
 0x290   :  { %v3250_v7 = vpop.eup %2490 }
 0x291   :  { %1224 = vperm.xlu0 %2444, %v3210_v22   ;;  %3691 = vst [vmem:[#allocation11_spill] sm:$0xff] %v3250_v7  ;;  %v3257_v24 = vpop.eup %2492 }
 0x292   :  { %1170 = vperm.xlu1 %2445, %v3196_v38   ;;  %v3259_v21 = vpop.eup %2494 }
 0x293   :  { %3692 = vst [vmem:[#allocation12_spill] sm:$0xff] %v3259_v21  ;;  %v3266_v48 = vpop.eup %2496 }
 0x294   :  { %v3268_v14 = vpop.eup %2498 }
 0x295   :  { %1182 = vperm.xlu0 %2444, %v3222_v5   ;;  %3693 = vst [vmem:[#allocation13_spill] sm:$0xff] %v3268_v14  ;;  %v3273_v49 = vpop.eup %2500 }
 0x296   :  { %1197 = vperm.xlu1 %2445, %v3208_v18   ;;  %v3276_v4 = vpop.eup %2502 }
 0x297   :  { %v3279_v30 = vpop.eup %2504 }
 0x298   :  { %3694 = vst [vmem:[#allocation14_spill] sm:$0xff] %v3279_v30  ;;  %v3282_v32 = vpop.eup %2506 }
 0x299   :  { %1230 = vperm.xlu0 %2444, %v3232_v47   ;;  %3695 = vst [vmem:[#allocation15_spill] sm:$0xff] %v3282_v32  ;;  %v3285_v33 = vpop.eup %2508 }
 0x29a   :  { %1206 = vperm.xlu1 %2445, %v3220_v9   ;;  %3696 = vst [vmem:[#allocation16_spill] sm:$0xff] %v3285_v33 }
 0x29d   :  { %1188 = vperm.xlu0 %2444, %v3241_v31  }
 0x29e   :  { %1212 = vperm.xlu1 %2445, %v3230_v34  }
 0x2a1   :  { %1236 = vperm.xlu0 %2444, %v3250_v7  }
 0x2a2   :  { %1173 = vperm.xlu1 %2445, %v3239_v59  }
 0x2a5   :  { %1194 = vperm.xlu0 %2444, %v3259_v21  }
 0x2a6   :  { %1221 = vperm.xlu1 %2445, %v3248_v0  }
 0x2a9   :  { %1242 = vperm.xlu0 %2444, %v3268_v14  }
 0x2aa   :  { %1179 = vperm.xlu1 %2445, %v3257_v24  }
 0x2ae   :  { %1227 = vperm.xlu1 %2445, %v3266_v48  }
 0x2b2   :  { %1185 = vperm.xlu1 %2445, %v3273_v49  }
 0x2b6   :  { %1233 = vperm.xlu1 %2445, %v3276_v4  }
 0x2ba   :  { %1191 = vperm.xlu1 %2445, %v3279_v30  }
 0x2be   :  { %1239 = vperm.xlu1 %2445, %v3282_v32  }
 0x2c2   :  { %1218 = vperm.xlu1 %2445, %v3285_v33  }
 0x2f8   :  { %v1150_v20 = vpop.permute.xlu0 %1149 }
 0x2f9   :  { %v1153_v3 = vpop.permute.xlu1 %1152  ;;  %v1247_v43 = vrot.slane %v1150_v20, %v2877_v16 }
 0x2fa   :  { %v1251_v8 = vrot.slane %v1153_v3, %v2877_v16 }
 0x2fc   :  { %v1201_v45 = vpop.permute.xlu0 %1200  ;;  %v1372_v2 = vsel %vm804_vm1, %v1251_v8, %v1247_v43 }
 0x2fd   :  { %v1156_v12 = vpop.permute.xlu1 %1155 }
 0x2fe   :  { %v1255_v56 = vrot.slane %v1156_v12, %v2877_v16 }
 0x300   :  { %v3288_v35 = vpop.permute.xlu0 %1203  ;;  %v1373_v6 = vsel %vm806_vm2, %v1255_v56, %v1372_v2 }
 0x301   :  { %v1159_v19 = vpop.permute.xlu1 %1158 }
 0x302   :  { %v1259_v57 = vrot.slane %v1159_v19, %v2877_v16 }
 0x304   :  { %v3290_v15 = vpop.permute.xlu0 %1209  ;;  %v1374_v58 = vsel %vm808_vm3, %v1259_v57, %v1373_v6 }
 0x305   :  { %v1162_v40 = vpop.permute.xlu1 %1161 }
 0x306   :  { %v1263_v62 = vrot.slane %v1162_v40, %v2877_v16 }
 0x308   :  { %v3297_v46 = vpop.permute.xlu0 %1215  ;;  %v1375_v29 = vsel %vm810_vm4, %v1263_v62, %v1374_v58 }
 0x309   :  { %v1165_v28 = vpop.permute.xlu1 %1164 }
 0x30a   :  { %v1267_v42 = vrot.slane %v1165_v28, %v2877_v16 }
 0x30c   :  { %v1376_v3 = vsel %vm812_vm5, %v1267_v42, %v1375_v29  ;;  %v1177_v20 = vpop.permute.xlu0 %1176 }
 0x30d   :  { %v1168_v23 = vpop.permute.xlu1 %1167 }
 0x30e   :  { %v1271_v55 = vrot.slane %v1168_v23, %v2877_v16 }
 0x310   :  { %v1377_v19 = vsel %vm814_vm6, %v1271_v55, %v1376_v3  ;;  %v1225_v43 = vpop.permute.xlu0 %1224  ;;  %v1283_v3 = vrot.slane %v1177_v20, %v2877_v16 }
 0x311   :  { %v1171_v63 = vpop.permute.xlu1 %1170  ;;  %v1347_v30 = vrot.slane %v1225_v43, %v2877_v16  ;;  %v1319_v43 = vrot.slane %v3288_v35, %v2877_v16 }
 0x312   :  { %v1275_v12 = vrot.slane %v1171_v63, %v2877_v16 }
 0x314   :  { %v1378_v40 = vsel %vm816_vm7, %v1275_v12, %v1377_v19  ;;  %v1183_v57 = vpop.permute.xlu0 %1182 }
 0x315   :  { %v1198_v8 = vpop.permute.xlu1 %1197  ;;  %v1404_v28 = vsel %vm843_vm8, %v1378_v40, 0.0 }
 0x316   :  { %1405 = vadd.xlane.f32.xlu1 %v1404_v28  ;;  %v1311_v19 = vrot.slane %v1198_v8, %v2877_v16 }
 0x318   :  { %v1231_v62 = vpop.permute.xlu0 %1230 }
 0x319   :  { %v1207_v56 = vpop.permute.xlu1 %1206 }
 0x31c   :  { %v1189_v42 = vpop.permute.xlu0 %1188 }
 0x31d   :  { %v1213_v23 = vpop.permute.xlu1 %1212 }
 0x320   :  { %v1237_v33 = vpop.permute.xlu0 %1236 }
 0x321   :  { %v1174_v2 = vpop.permute.xlu1 %1173 }
 0x322   :  { %v1279_v63 = vrot.slane %v1174_v2, %v2877_v16  ;;  %v1315_v2 = vrot.slane %v1201_v45, %v2877_v16 }
 0x324   :  { %v1379_v40 = vsel %vm804_vm1, %v1283_v3, %v1279_v63  ;;  %v1195_v7 = vpop.permute.xlu0 %1194  ;;  %v1386_v8 = vsel %vm804_vm1, %v1315_v2, %v1311_v19  ;;  %v1327_v2 = vrot.slane %v3290_v15, %v2877_v16 }
 0x325   :  { %v1222_v6 = vpop.permute.xlu1 %1221 }
 0x326   :  { %v1343_v28 = vrot.slane %v1222_v6, %v2877_v16 }
 0x328   :  { %v1393_v63 = vsel %vm804_vm1, %v1347_v30, %v1343_v28  ;;  %v1331_v28 = vrot.slane %v1213_v23, %v2877_v16  ;;  %v1243_v35 = vpop.permute.xlu0 %1242 }
 0x329   :  { %v1180_v58 = vpop.permute.xlu1 %1179  ;;  %v1371_v23 = vrot.slane %v1243_v35, %v2877_v16 }
 0x32a   :  { %v1287_v55 = vrot.slane %v1180_v58, %v2877_v16  ;;  %v1291_v58 = vrot.slane %v1183_v57, %v2877_v16  ;;  %v1355_v57 = vrot.slane %v1231_v62, %v2877_v16 }
 0x32c   :  { %v1380_v14 = vsel %vm806_vm2, %v1287_v55, %v1379_v40  ;;  %v1323_v55 = vrot.slane %v1207_v56, %v2877_v16  ;;  %v1307_v56 = vrot.slane %v1195_v7, %v2877_v16 }
 0x32d   :  { %v1228_v29 = vpop.permute.xlu1 %1227  ;;  %v1381_v6 = vsel %vm808_vm3, %v1291_v58, %v1380_v14  ;;  %v1387_v14 = vsel %vm806_vm2, %v1319_v43, %v1386_v8  ;;  %v1363_v58 = vrot.slane %v1237_v33, %v2877_v16  ;;  %v1335_v33 = vrot.slane %v3297_v46, %v2877_v16 }
 0x32e   :  { %v1351_v32 = vrot.slane %v1228_v29, %v2877_v16  ;;  %v1388_v40 = vsel %vm808_vm3, %v1323_v55, %v1387_v14 }
 0x330   :  { %v1394_v29 = vsel %vm806_vm2, %v1351_v32, %v1393_v63 }
 0x331   :  { %v1186_v12 = vpop.permute.xlu1 %1185  ;;  %v1395_v32 = vsel %vm808_vm3, %v1355_v57, %v1394_v29 }
 0x332   :  { %v1295_v21 = vrot.slane %v1186_v12, %v2877_v16  ;;  %v1299_v12 = vrot.slane %v1189_v42, %v2877_v16 }
 0x334   :  { %v1382_v3 = vsel %vm810_vm4, %v1295_v21, %v1381_v6  ;;  %v1389_v6 = vsel %vm810_vm4, %v1327_v2, %v1388_v40 }
 0x335   :  { %v1234_v20 = vpop.permute.xlu1 %1233  ;;  %v1383_v21 = vsel %vm812_vm5, %v1299_v12, %v1382_v3  ;;  %v1390_v29 = vsel %vm812_vm5, %v1331_v28, %v1389_v6 }
 0x336   :  { %v1359_v45 = vrot.slane %v1234_v20, %v2877_v16  ;;  %v1391_v12 = vsel %vm814_vm6, %v1335_v33, %v1390_v29 }
 0x338   :  { %v1396_v62 = vsel %vm810_vm4, %v1359_v45, %v1395_v32 }
 0x339   :  { %v1192_v19 = vpop.permute.xlu1 %1191  ;;  %v1397_v55 = vsel %vm812_vm5, %v1363_v58, %v1396_v62 }
 0x33a   :  { %v1303_v30 = vrot.slane %v1192_v19, %v2877_v16 }
 0x33c   :  { %v1384_v42 = vsel %vm814_vm6, %v1303_v30, %v1383_v21 }
 0x33d   :  { %v1240_v20 = vpop.permute.xlu1 %1239  ;;  %v1385_v7 = vsel %vm816_vm7, %v1307_v56, %v1384_v42 }
 0x33e   :  { %v1367_v8 = vrot.slane %v1240_v20, %v2877_v16  ;;  %v1407_v63 = vsel %vm843_vm8, %v1385_v7, 0.0 }
 0x33f   :  { %1408 = vadd.xlane.f32.xlu0 %v1407_v63 }
 0x340   :  { %v1398_v15 = vsel %vm814_vm6, %v1367_v8, %v1397_v55 }
 0x341   :  { %v1219_v3 = vpop.permute.xlu1 %1218  ;;  %v1399_v45 = vsel %vm816_vm7, %v1371_v23, %v1398_v15 }
 0x342   :  { %v1339_v43 = vrot.slane %v1219_v3, %v2877_v16  ;;  %v1413_v57 = vsel %vm843_vm8, %v1399_v45, 0.0 }
 0x343   :  { %1414 = vadd.xlane.f32.xlu1 %v1413_v57 }
 0x344   :  { %v1392_v19 = vsel %vm816_vm7, %v1339_v43, %v1391_v12 }
 0x345   :  { %v1410_v30 = vsel %vm843_vm8, %v1392_v19, 0.0 }
 0x346   :  { %1411 = vadd.xlane.f32.xlu0 %v1410_v30 }
 0x3a3   :  { %v1406_v14 = vpop.xlane.xlu1 %1405 }
 0x3a4   :  { %2510 = vrcp.f32 %v1406_v14 }
 0x3ae   :  { %v2511_v56 = vpop.eup %2510 }
 0x3af   :  { %v1420_v32 = vmul.f32 %v2511_v56, %v1406_v14 }
 0x3b1   :  { %v1424_v46 = vsub.f32 2.0, %v1420_v32 }
 0x3b3   :  { %v1428_v21 = vmul.f32 %v2511_v56, %v1424_v46 }
 0x3b5   :  { %v1439_v40 = vrot.slane %v1428_v21, %v3075_v41  ;;  %v1443_v28 = vrot.slane %v1428_v21, %v3078_v60  ;;  %v1451_v42 = vrot.slane %v1428_v21, %v3084_v44  ;;  %v1447_v2 = vrot.slane %v1428_v21, %v3081_v17 }
 0x3b6   :  { %v1459_v7 = vrot.slane %v1428_v21, %v3101_v10  ;;  %v1455_v8 = vrot.slane %v1428_v21, %v3090_v51  ;;  %v1467_v63 = vrot.slane %v1428_v21, %v3117_v39  ;;  %v1463_v6 = vrot.slane %v1428_v21, %v3109_v11 }
 0x3b7   :  { %v1596_v35 = vmul.f32 %v3124_v52, %v1439_v40  ;;  %v1597_v62 = vmul.f32 %v3128_v50, %v1443_v28  ;;  %v1599_v58 = vmul.f32 %v3148_v61, %v1451_v42  ;;  %v1598_v20 = vmul.f32 %v3139_v1, %v1447_v2 }
 0x3b8   :  { %v1601_v52 = vmul.f32 %v3172_v36, %v1459_v7  ;;  %v1600_v50 = vmul.f32 %v3160_v27, %v1455_v8  ;;  %v1603_v61 = vmul.f32 %v3196_v38, %v1467_v63  ;;  %v1602_v1 = vmul.f32 %v3184_v53, %v1463_v6 }
 0x3b9   :  { %1661 = vperm.xlu0 %2444, %v1596_v35   ;;  %1664 = vperm.xlu1 %2445, %v1597_v62  }
 0x3bd   :  { %1670 = vperm.xlu0 %2444, %v1599_v58   ;;  %1667 = vperm.xlu1 %2445, %v1598_v20  }
 0x3c1   :  { %1676 = vperm.xlu0 %2444, %v1601_v52   ;;  %1673 = vperm.xlu1 %2445, %v1600_v50  }
 0x3c5   :  { %1682 = vperm.xlu0 %2444, %v1603_v61   ;;  %1679 = vperm.xlu1 %2445, %v1602_v1   ;;  %v3697_v61 = vld [vmem:[#allocation11_spill] sm:$0xff]  ;;  %v3698_v1 = vld [vmem:[#allocation14_spill] sm:$0xff] }
 0x3cc   :  { %v1409_v23 = vpop.xlane.xlu0 %1408 }
 0x3d0   :  { %v1415_v29 = vpop.xlane.xlu1 %1414 }
 0x3d3   :  { %v1412_v55 = vpop.xlane.xlu0 %1411 }
 0x3d4   :  { %2512 = vrcp.f32 %v1412_v55 }
 0x3d5   :  { %2514 = vrcp.f32 %v1409_v23 }
 0x3d6   :  { %2516 = vrcp.f32 %v1415_v29 }
 0x3de   :  { %v2513_v36 = vpop.eup %2512 }
 0x3df   :  { %v2515_v27 = vpop.eup %2514  ;;  %v1422_v15 = vmul.f32 %v2513_v36, %v1412_v55  ;;  %v3699_v55 = vld [vmem:[#allocation12_spill] sm:$0xff] }
 0x3e0   :  { %v1421_v3 = vmul.f32 %v2515_v27, %v1409_v23  ;;  %v2517_v45 = vpop.eup %2516 }
 0x3e1   :  { %v1426_v33 = vsub.f32 2.0, %v1422_v15  ;;  %v1423_v12 = vmul.f32 %v2517_v45, %v1415_v29  ;;  %v3700_v29 = vld [vmem:[#allocation15_spill] sm:$0xff] }
 0x3e2   :  { %v1425_v57 = vsub.f32 2.0, %v1421_v3 }
 0x3e3   :  { %v3377_v43 = vmul.f32 %v2513_v36, %v1426_v33  ;;  %v1427_v46 = vsub.f32 2.0, %v1423_v12  ;;  %v3702_v33 = vld [vmem:[#allocation16_spill] sm:$0xff] }
 0x3e4   :  { %v1429_v32 = vmul.f32 %v2515_v27, %v1425_v57  ;;  %v3701_v27 = vld [vmem:[#allocation13_spill] sm:$0xff]  ;;  %v2519_v57 = vld [vmem:[#allocation2] sm:$0xff] }
 0x3e5   :  { %v1507_v38 = vrot.slane %v3377_v43, %v3078_v60  ;;  %v1503_v53 = vrot.slane %v3377_v43, %v3075_v41  ;;  %v1511_v14 = vrot.slane %v3377_v43, %v3081_v17  ;;  %v1515_v56 = vrot.slane %v3377_v43, %v3084_v44 }
 0x3e6   :  { %v1519_v28 = vrot.slane %v3377_v43, %v3090_v51  ;;  %v1431_v35 = vmul.f32 %v2517_v45, %v1427_v46  ;;  %v1475_v58 = vrot.slane %v1429_v32, %v3078_v60  ;;  %v1479_v8 = vrot.slane %v1429_v32, %v3081_v17 }
 0x3e7   :  { %v1613_v19 = vmul.f32 %v3150_v13, %v1507_v38  ;;  %v1612_v30 = vmul.f32 %v3208_v18, %v1503_v53  ;;  %v1614_v21 = vmul.f32 %v3162_v25, %v1511_v14  ;;  %v1615_v40 = vmul.f32 %v3220_v9, %v1515_v56  ;;  %v2518_v38 = vld [vmem:[#allocation2 + $0x8] sm:$0xff] }
 0x3e8   :  { %v1523_v13 = vrot.slane %v3377_v43, %v3101_v10  ;;  %v1471_v18 = vrot.slane %v1429_v32, %v3075_v41  ;;  %v1616_v62 = vmul.f32 %v3174_v26, %v1519_v28  ;;  %v1527_v25 = vrot.slane %v3377_v43, %v3109_v11 }
 0x3e9   :  { %1712 = vperm.xlu0 %2444, %v1613_v19   ;;  %1709 = vperm.xlu1 %2445, %v1612_v30   ;;  %v1535_v20 = vrot.slane %v1431_v35, %v3075_v41  ;;  %v1605_v7 = vmul.f32 %v3198_v54, %v1475_v58  ;;  %v1483_v52 = vrot.slane %v1429_v32, %v3084_v44 }
 0x3ea   :  { %v1617_v42 = vmul.f32 %v3230_v34, %v1523_v13  ;;  %v1618_v9 = vmul.f32 %v3186_v37, %v1527_v25  ;;  %v1604_v2 = vmul.f32 %v3239_v59, %v1471_v18  ;;  %v1539_v34 = vrot.slane %v1431_v35, %v3078_v60  ;;  %v2521_v18 = vld [vmem:[#allocation2 + $0x18] sm:$0xff] }
 0x3eb   :  { %v1620_v26 = vmul.f32 %v3248_v0, %v1535_v20  ;;  %v1606_v59 = vmul.f32 %v3257_v24, %v1479_v8  ;;  %v1543_v41 = vrot.slane %v1431_v35, %v3081_v17  ;;  %v1607_v54 = vmul.f32 %v3222_v5, %v1483_v52 }
 0x3ec   :  { %v1621_v37 = vmul.f32 %v3210_v22, %v1539_v34  ;;  %v1547_v60 = vrot.slane %v1431_v35, %v3084_v44  ;;  %v1487_v50 = vrot.slane %v1429_v32, %v3090_v51  ;;  %v1491_v63 = vrot.slane %v1429_v32, %v3101_v10 }
 0x3ed   :  { %1715 = vperm.xlu0 %2444, %v1614_v21   ;;  %1718 = vperm.xlu1 %2445, %v1615_v40   ;;  %v1622_v0 = vmul.f32 %v3266_v48, %v1543_v41  ;;  %v1551_v17 = vrot.slane %v1431_v35, %v3090_v51  ;;  %v1555_v44 = vrot.slane %v1431_v35, %v3101_v10  ;;  %v2520_v40 = vld [vmem:[#allocation2 + $0x10] sm:$0xff]  ;;  %v2522_v41 = vld [vmem:[#allocation2 + $0x20] sm:$0xff] }
 0x3ee   :  { %v1623_v22 = vmul.f32 %v3232_v47, %v1547_v60  ;;  %v1608_v24 = vmul.f32 %v3273_v49, %v1487_v50  ;;  %v1609_v5 = vmul.f32 %v3241_v31, %v1491_v63  ;;  %v1495_v6 = vrot.slane %v1429_v32, %v3109_v11 }
 0x3ef   :  { %v1624_v48 = vmul.f32 %v3276_v4, %v1551_v17  ;;  %v1625_v47 = vmul.f32 %v3697_v61, %v1555_v44  ;;  %v1499_v23 = vrot.slane %v1429_v32, %v3117_v39  ;;  %v1559_v51 = vrot.slane %v1431_v35, %v3109_v11 }
 0x3f0   :  { %v1610_v49 = vmul.f32 %v3698_v1, %v1495_v6  ;;  %v1563_v10 = vrot.slane %v1431_v35, %v3117_v39  ;;  %v1531_v36 = vrot.slane %v3377_v43, %v3117_v39 }
 0x3f1   :  { %1721 = vperm.xlu0 %2444, %v1616_v62   ;;  %1724 = vperm.xlu1 %2445, %v1617_v42   ;;  %v1611_v31 = vmul.f32 %v3699_v55, %v1499_v23  ;;  %v1626_v4 = vmul.f32 %v3700_v29, %v1559_v51 }
 0x3f2   :  { %v1627_v15 = vmul.f32 %v3701_v27, %v1563_v10  ;;  %v1619_v3 = vmul.f32 %v3702_v33, %v1531_v36  ;;  %v2524_v33 = vld [vmem:[#allocation2 + $0x30] sm:$0xff] }
 0x3f5   :  { %1727 = vperm.xlu0 %2444, %v1618_v9   ;;  %1685 = vperm.xlu1 %2445, %v1604_v2  }
 0x3f9   :  { %1688 = vperm.xlu0 %2444, %v1605_v7   ;;  %1733 = vperm.xlu1 %2445, %v1620_v26  }
 0x3fd   :  { %1736 = vperm.xlu0 %2444, %v1621_v37   ;;  %1691 = vperm.xlu1 %2445, %v1606_v59  }
 0x401   :  { %1694 = vperm.xlu0 %2444, %v1607_v54   ;;  %1739 = vperm.xlu1 %2445, %v1622_v0  }
 0x405   :  { %1742 = vperm.xlu0 %2444, %v1623_v22   ;;  %1697 = vperm.xlu1 %2445, %v1608_v24   ;;  %v2523_v24 = vld [vmem:[#allocation2 + $0x28] sm:$0xff] }
 0x409   :  { %1700 = vperm.xlu0 %2444, %v1609_v5   ;;  %1745 = vperm.xlu1 %2445, %v1624_v48  }
 0x40d   :  { %1748 = vperm.xlu0 %2444, %v1625_v47   ;;  %1703 = vperm.xlu1 %2445, %v1610_v49  }
 0x411   :  { %1706 = vperm.xlu0 %2444, %v1611_v31   ;;  %1751 = vperm.xlu1 %2445, %v1626_v4  }
 0x415   :  { %1754 = vperm.xlu0 %2444, %v1627_v15   ;;  %1730 = vperm.xlu1 %2445, %v1619_v3  }
 0x438   :  { %v1665_v11 = vpop.permute.xlu1 %1664  ;;  %v1662_v45 = vpop.permute.xlu0 %1661 }
 0x439   :  { %v1953_v53 = vmul.f32 %v2518_v38, %v1665_v11  ;;  %v1952_v12 = vmul.f32 %v2519_v57, %v1662_v45  ;;  %v1763_v19 = vrot.slane %v1665_v11, %v2877_v16  ;;  %v1759_v30 = vrot.slane %v1662_v45, %v2877_v16 }
 0x43b   :  { %v1991_v39 = vsel %vm86_vm0, %v1953_v53, 0.0  ;;  %v1984_v43 = vsel %vm86_vm0, %v1952_v12, 0.0  ;;  %v1884_v42 = vsel %vm804_vm1, %v1763_v19, %v1759_v30  ;;  %v2525_v30 = vld [vmem:[#allocation2 + $0x38] sm:$0xff] }
 0x43c   :  { %v1992_v14 = vrot.slane %v1991_v39, 4  ;;  %v1985_v56 = vrot.slane %v1984_v43, 4  ;;  %v1668_v32 = vpop.permute.xlu1 %1667  ;;  %v1671_v46 = vpop.permute.xlu0 %1670 }
 0x43d   :  { %v1767_v21 = vrot.slane %v1668_v32, %v2877_v16  ;;  %v1954_v28 = vmul.f32 %v2520_v40, %v1668_v32  ;;  %v1771_v13 = vrot.slane %v1671_v46, %v2877_v16  ;;  %v1955_v35 = vmul.f32 %v2521_v18, %v1671_v46 }
 0x43e   :  { %v1993_v62 = vadd.f32 %v1992_v14, %v1991_v39  ;;  %v1986_v25 = vadd.f32 %v1985_v56, %v1984_v43 }
 0x43f   :  { %v1885_v9 = vsel %vm806_vm2, %v1767_v21, %v1884_v42  ;;  %v1998_v2 = vsel %vm86_vm0, %v1954_v28, 0.0  ;;  %v2005_v58 = vsel %vm86_vm0, %v1955_v35, 0.0 }
 0x440   :  { %v1994_v20 = vrot.slane %v1993_v62, 2  ;;  %v1987_v7 = vrot.slane %v1986_v25, 2  ;;  %v1999_v26 = vrot.slane %v1998_v2, 4  ;;  %v1886_v34 = vsel %vm808_vm3, %v1771_v13, %v1885_v9  ;;  %v1674_v8 = vpop.permute.xlu1 %1673  ;;  %v1677_v37 = vpop.permute.xlu0 %1676 }
 0x441   :  { %v2006_v59 = vrot.slane %v2005_v58, 4  ;;  %v1775_v52 = vrot.slane %v1674_v8, %v2877_v16  ;;  %v1956_v54 = vmul.f32 %v2522_v41, %v1674_v8  ;;  %v1779_v0 = vrot.slane %v1677_v37, %v2877_v16 }
 0x442   :  { %v1995_v60 = vadd.f32 %v1994_v20, %v1993_v62  ;;  %v1988_v50 = vadd.f32 %v1987_v7, %v1986_v25  ;;  %v2000_v22 = vadd.f32 %v1999_v26, %v1998_v2  ;;  %v1957_v63 = vmul.f32 %v2523_v24, %v1677_v37 }
 0x443   :  { %v2007_v17 = vadd.f32 %v2006_v59, %v2005_v58  ;;  %v1887_v5 = vsel %vm810_vm4, %v1775_v52, %v1886_v34  ;;  %v2012_v48 = vsel %vm86_vm0, %v1956_v54, 0.0 }
 0x444   :  { %v1996_v44 = vrot.slane %v1995_v60, 1  ;;  %v1989_v6 = vrot.slane %v1988_v50, 1  ;;  %v2001_v61 = vrot.slane %v2000_v22, 2  ;;  %v2013_v47 = vrot.slane %v2012_v48, 4  ;;  %v1680_v1 = vpop.permute.xlu1 %1679  ;;  %v1683_v55 = vpop.permute.xlu0 %1682 }
 0x445   :  { %v2008_v49 = vrot.slane %v2007_v17, 2  ;;  %v2019_v23 = vsel %vm86_vm0, %v1957_v63, 0.0  ;;  %v1783_v51 = vrot.slane %v1680_v1, %v2877_v16  ;;  %v1888_v10 = vsel %vm812_vm5, %v1779_v0, %v1887_v5  ;;  %v2526_v63 = vld [vmem:[#allocation2 + $0x80] sm:$0xff]  ;;  %v2527_v5 = vld [vmem:[#allocation2 + $0x88] sm:$0xff] }
 0x446   :  { %v1997_v31 = vadd.f32 %v1996_v44, %v1995_v60  ;;  %v2002_v29 = vadd.f32 %v2001_v61, %v2000_v22  ;;  %v2014_v4 = vadd.f32 %v2013_v47, %v2012_v48  ;;  %v2020_v27 = vrot.slane %v2019_v23, 4 }
 0x447   :  { %v2009_v36 = vadd.f32 %v2008_v49, %v2007_v17  ;;  %v1889_v15 = vsel %vm814_vm6, %v1783_v51, %v1888_v10  ;;  %v1958_v3 = vmul.f32 %v2524_v33, %v1680_v1  ;;  %v1990_v11 = vadd.f32 %v1989_v6, %v1988_v50 }
 0x448   :  { %v2003_v45 = vrot.slane %v2002_v29, 1  ;;  %v2015_v38 = vrot.slane %v2014_v4, 2  ;;  %v1787_v53 = vrot.slane %v1683_v55, %v2877_v16  ;;  %v2021_v12 = vadd.f32 %v2020_v27, %v2019_v23  ;;  %v2528_v23 = vld [vmem:[#allocation2 + $0x98] sm:$0xff] }
 0x449   :  { %v2010_v57 = vrot.slane %v2009_v36, 1  ;;  %v2026_v19 = vsel %vm86_vm0, %v1958_v3, 0.0  ;;  %v1959_v39 = vmul.f32 %v2525_v30, %v1683_v55  ;;  %v2240_v18 = vsel %vm804_vm1, %v1997_v31, %v1990_v11  ;;  %v2529_v55 = vld [vmem:[#allocation2 + $0x90] sm:$0xff] }
 0x44a   :  { %v2004_v43 = vadd.f32 %v2003_v45, %v2002_v29  ;;  %v2016_v14 = vadd.f32 %v2015_v38, %v2014_v4  ;;  %v2027_v56 = vrot.slane %v2026_v19, 4  ;;  %v1890_v32 = vsel %vm816_vm7, %v1787_v53, %v1889_v15  ;;  %v2530_v38 = vld [vmem:[#allocation2 + $0xa8] sm:$0xff] }
 0x44b   :  { %v2022_v46 = vrot.slane %v2021_v12, 2  ;;  %1916 = vst.msk [vmem:[%s3684_s4] sm:$0xff] %vm843_vm8, %v1890_v32  ;;  %v2033_v21 = vsel %vm86_vm0, %v1959_v39, 0.0  ;;  %v2011_v35 = vadd.f32 %v2010_v57, %v2009_v36 }
 0x44c   :  { %v2017_v40 = vrot.slane %v2016_v14, 1  ;;  %v2028_v28 = vadd.f32 %v2027_v56, %v2026_v19  ;;  %v2034_v13 = vrot.slane %v2033_v21, 4  ;;  %v2241_v42 = vsel %vm806_vm2, %v2004_v43, %v2240_v18  ;;  %v2531_v43 = vld [vmem:[#allocation2 + $0xa0] sm:$0xff] }
 0x44d   :  { %v2023_v62 = vadd.f32 %v2022_v46, %v2021_v12  ;;  %v2242_v26 = vsel %vm808_vm3, %v2011_v35, %v2241_v42  ;;  %v2532_v35 = vld [vmem:[#allocation2 + $0x40] sm:$0xff] }
 0x44e   :  { %v2018_v25 = vadd.f32 %v2017_v40, %v2016_v14  ;;  %v2029_v9 = vrot.slane %v2028_v28, 2  ;;  %v2035_v2 = vadd.f32 %v2034_v13, %v2033_v21 }
 0x44f   :  { %v2024_v58 = vrot.slane %v2023_v62, 1 }
 0x450   :  { %v2030_v20 = vadd.f32 %v2029_v9, %v2028_v28  ;;  %v2036_v7 = vrot.slane %v2035_v2, 2  ;;  %v2243_v8 = vsel %vm810_vm4, %v2018_v25, %v2242_v26 }
 0x451   :  { %v2025_v34 = vadd.f32 %v2024_v58, %v2023_v62 }
 0x452   :  { %v2031_v37 = vrot.slane %v2030_v20, 1  ;;  %v2037_v59 = vadd.f32 %v2036_v7, %v2035_v2 }
 0x453   :  { %v2244_v54 = vsel %vm812_vm5, %v2025_v34, %v2243_v8 }
 0x454   :  { %v2032_v52 = vadd.f32 %v2031_v37, %v2030_v20  ;;  %v2038_v41 = vrot.slane %v2037_v59, 1 }
 0x456   :  { %v2039_v0 = vadd.f32 %v2038_v41, %v2037_v59  ;;  %v2245_v60 = vsel %vm814_vm6, %v2032_v52, %v2244_v54  ;;  %v2533_v54 = vld [vmem:[#allocation2 + $0xb0] sm:$0xff] }
 0x458   :  { %v2246_v50 = vsel %vm816_vm7, %v2039_v0, %v2245_v60 }
 0x459   :  { %2272 = vst.msk [vmem:[#allocation7] sm:$0xff] %vm86_vm0, %v2246_v50 }
 0x468   :  { %v1710_v22 = vpop.permute.xlu1 %1709  ;;  %v1713_v24 = vpop.permute.xlu0 %1712 }
 0x469   :  { %v1968_v17 = vmul.f32 %v2526_v63, %v1710_v22  ;;  %v1969_v48 = vmul.f32 %v2527_v5, %v1713_v24  ;;  %v1823_v19 = vrot.slane %v1710_v22, %v2877_v16  ;;  %v1827_v30 = vrot.slane %v1713_v24, %v2877_v16 }
 0x46b   :  { %v2096_v44 = vsel %vm86_vm0, %v1968_v17, 0.0  ;;  %v2103_v6 = vsel %vm86_vm0, %v1969_v48, 0.0  ;;  %v1898_v25 = vsel %vm804_vm1, %v1827_v30, %v1823_v19  ;;  %v2534_v48 = vld [vmem:[#allocation2 + $0xc0] sm:$0xff] }
 0x46c   :  { %v2097_v61 = vrot.slane %v2096_v44, 4  ;;  %v2104_v47 = vrot.slane %v2103_v6, 4  ;;  %v1719_v1 = vpop.permute.xlu1 %1718  ;;  %v1716_v49 = vpop.permute.xlu0 %1715 }
 0x46d   :  { %v1971_v51 = vmul.f32 %v2528_v23, %v1719_v1  ;;  %v1970_v31 = vmul.f32 %v2529_v55, %v1716_v49  ;;  %v1831_v46 = vrot.slane %v1716_v49, %v2877_v16  ;;  %v1835_v9 = vrot.slane %v1719_v1, %v2877_v16 }
 0x46e   :  { %v2098_v29 = vadd.f32 %v2097_v61, %v2096_v44  ;;  %v2105_v4 = vadd.f32 %v2104_v47, %v2103_v6 }
 0x46f   :  { %v2117_v10 = vsel %vm86_vm0, %v1971_v51, 0.0  ;;  %v2110_v36 = vsel %vm86_vm0, %v1970_v31, 0.0  ;;  %v1899_v7 = vsel %vm806_vm2, %v1831_v46, %v1898_v25 }
 0x470   :  { %v2099_v27 = vrot.slane %v2098_v29, 2  ;;  %v2106_v15 = vrot.slane %v2105_v4, 2  ;;  %v2118_v33 = vrot.slane %v2117_v10, 4  ;;  %v2111_v3 = vrot.slane %v2110_v36, 4  ;;  %v1725_v11 = vpop.permute.xlu1 %1724  ;;  %v1722_v45 = vpop.permute.xlu0 %1721 }
 0x471   :  { %v1973_v53 = vmul.f32 %v2530_v38, %v1725_v11  ;;  %v1972_v14 = vmul.f32 %v2531_v43, %v1722_v45  ;;  %v1839_v26 = vrot.slane %v1722_v45, %v2877_v16  ;;  %v1900_v22 = vsel %vm808_vm3, %v1835_v9, %v1899_v7 }
 0x472   :  { %v2119_v57 = vadd.f32 %v2118_v33, %v2117_v10  ;;  %v2112_v12 = vadd.f32 %v2111_v3, %v2110_v36  ;;  %v2100_v56 = vadd.f32 %v2099_v27, %v2098_v29  ;;  %v2107_v32 = vadd.f32 %v2106_v15, %v2105_v4  ;;  %v2535_v29 = vld [vmem:[#allocation2 + $0x48] sm:$0xff] }
 0x473   :  { %v2131_v39 = vsel %vm86_vm0, %v1973_v53, 0.0  ;;  %v2124_v18 = vsel %vm86_vm0, %v1972_v14, 0.0  ;;  %v1843_v17 = vrot.slane %v1725_v11, %v2877_v16  ;;  %v1901_v5 = vsel %vm810_vm4, %v1839_v26, %v1900_v22  ;;  %v2538_v26 = vld [vmem:[#allocation2 + $0xd0] sm:$0xff] }
 0x474   :  { %v3478_v21 = vpop.permute.xlu1 %1685  ;;  %v3480_v40 = vpop.permute.xlu0 %1727  ;;  %v2113_v28 = vrot.slane %v2112_v12, 2  ;;  %v2132_v13 = vrot.slane %v2131_v39, 4  ;;  %v2120_v42 = vrot.slane %v2119_v57, 2  ;;  %v2125_v2 = vrot.slane %v2124_v18, 4 }
 0x475   :  { %v1960_v62 = vmul.f32 %v2532_v35, %v3478_v21  ;;  %v2101_v20 = vrot.slane %v2100_v56, 1  ;;  %v2108_v59 = vrot.slane %v2107_v32, 1  ;;  %v1974_v0 = vmul.f32 %v2533_v54, %v3480_v40  ;;  %v2537_v35 = vld [vmem:[#allocation2 + $0xc8] sm:$0xff] }
 0x476   :  { %v2114_v52 = vadd.f32 %v2113_v28, %v2112_v12  ;;  %v2133_v41 = vadd.f32 %v2132_v13, %v2131_v39  ;;  %v2121_v60 = vadd.f32 %v2120_v42, %v2119_v57  ;;  %v2126_v50 = vadd.f32 %v2125_v2, %v2124_v18  ;;  %v2536_v57 = vld [vmem:[#allocation2 + $0x50] sm:$0xff] }
 0x477   :  { %v2040_v58 = vsel %vm86_vm0, %v1960_v62, 0.0  ;;  %v2102_v63 = vadd.f32 %v2101_v20, %v2100_v56  ;;  %v2109_v47 = vadd.f32 %v2108_v59, %v2107_v32  ;;  %v2138_v23 = vsel %vm86_vm0, %v1974_v0, 0.0 }
 0x478   :  { %v2041_v34 = vrot.slane %v2040_v58, 4  ;;  %v3489_v8 = vpop.permute.xlu1 %1733  ;;  %v3491_v37 = vpop.permute.xlu0 %1688  ;;  %v2115_v1 = vrot.slane %v2114_v52, 1  ;;  %v2134_v49 = vrot.slane %v2133_v41, 2  ;;  %v2122_v51 = vrot.slane %v2121_v60, 1 }
 0x479   :  { %v1976_v44 = vmul.f32 %v2534_v48, %v3489_v8  ;;  %v2127_v55 = vrot.slane %v2126_v50, 2  ;;  %v1961_v4 = vmul.f32 %v2535_v29, %v3491_v37  ;;  %v1791_v27 = vrot.slane %v3478_v21, %v2877_v16 }
 0x47a   :  { %v2042_v24 = vadd.f32 %v2041_v34, %v2040_v58  ;;  %v1902_v15 = vsel %vm812_vm5, %v1843_v17, %v1901_v5  ;;  %v2139_v33 = vrot.slane %v2138_v23, 4  ;;  %v2116_v45 = vadd.f32 %v2115_v1, %v2114_v52  ;;  %v2540_v1 = vld [vmem:[#allocation2 + $0x60] sm:$0xff] }
 0x47b   :  { %v2152_v31 = vsel %vm86_vm0, %v1976_v44, 0.0  ;;  %v2047_v3 = vsel %vm86_vm0, %v1961_v4, 0.0  ;;  %v2135_v38 = vadd.f32 %v2134_v49, %v2133_v41  ;;  %v2254_v30 = vsel %vm804_vm1, %v2109_v47, %v2102_v63 }
 0x47c   :  { %v3498_v6 = vpop.permute.xlu1 %1691  ;;  %v3500_v61 = vpop.permute.xlu0 %1736  ;;  %v2043_v10 = vrot.slane %v2042_v24, 2  ;;  %v2153_v36 = vrot.slane %v2152_v31, 4  ;;  %v2048_v53 = vrot.slane %v2047_v3, 4  ;;  %v2123_v39 = vadd.f32 %v2122_v51, %v2121_v60 }
 0x47d   :  { %v1962_v12 = vmul.f32 %v2536_v57, %v3498_v6  ;;  %v2128_v43 = vadd.f32 %v2127_v55, %v2126_v50  ;;  %v1847_v14 = vrot.slane %v3480_v40, %v2877_v16  ;;  %v2140_v28 = vadd.f32 %v2139_v33, %v2138_v23  ;;  %v2539_v50 = vld [vmem:[#allocation2 + $0x58] sm:$0xff] }
 0x47e   :  { %v2044_v56 = vadd.f32 %v2043_v10, %v2042_v24  ;;  %v2154_v32 = vadd.f32 %v2153_v36, %v2152_v31  ;;  %v2049_v46 = vadd.f32 %v2048_v53, %v2047_v3  ;;  %v1855_v13 = vrot.slane %v3489_v8, %v2877_v16 }
 0x47f   :  { %v2054_v21 = vsel %vm86_vm0, %v1962_v12, 0.0  ;;  %v1977_v62 = vmul.f32 %v2537_v35, %v3500_v61  ;;  %v2255_v42 = vsel %vm806_vm2, %v2116_v45, %v2254_v30  ;;  %v2136_v25 = vrot.slane %v2135_v38, 1  ;;  %v2541_v12 = vld [vmem:[#allocation2 + $0xd8] sm:$0xff] }
 0x480   :  { %v3509_v11 = vpop.permute.xlu1 %1739  ;;  %v3512_v19 = vpop.permute.xlu0 %1694  ;;  %v2055_v18 = vrot.slane %v2054_v21, 4  ;;  %v1795_v9 = vrot.slane %v3491_v37, %v2877_v16  ;;  %v2050_v40 = vrot.slane %v2049_v46, 2  ;;  %v2129_v58 = vrot.slane %v2128_v43, 1 }
 0x481   :  { %v2159_v7 = vsel %vm86_vm0, %v1977_v62, 0.0  ;;  %v1978_v34 = vmul.f32 %v2538_v26, %v3509_v11  ;;  %v2045_v8 = vrot.slane %v2044_v56, 1  ;;  %v3529_v59 = vsel %vm814_vm6, %v1847_v14, %v1902_v15 }
 0x482   :  { %v2056_v20 = vadd.f32 %v2055_v18, %v2054_v21  ;;  %v2155_v52 = vrot.slane %v2154_v32, 2  ;;  %v2160_v41 = vrot.slane %v2159_v7, 4  ;;  %v2256_v37 = vsel %vm808_vm3, %v2123_v39, %v2255_v42 }
 0x483   :  { %v2141_v0 = vrot.slane %v2140_v28, 2  ;;  %v1799_v60 = vrot.slane %v3498_v6, %v2877_v16  ;;  %v1963_v22 = vmul.f32 %v2539_v50, %v3512_v19  ;;  %v3537_v24 = vadd.f32 %v2136_v25, %v2135_v38 }
 0x484   :  { %v3524_v2 = vpop.permute.xlu1 %1697  ;;  %v3531_v54 = vpop.permute.xlu0 %1742  ;;  %v1891_v63 = vsel %vm804_vm1, %v1795_v9, %v1791_v27  ;;  %v2051_v17 = vadd.f32 %v2050_v40, %v2049_v46  ;;  %v2057_v5 = vrot.slane %v2056_v20, 2  ;;  %v2130_v48 = vadd.f32 %v2129_v58, %v2128_v43 }
 0x485   :  { %v2166_v44 = vsel %vm86_vm0, %v1978_v34, 0.0  ;;  %v2061_v47 = vsel %vm86_vm0, %v1963_v22, 0.0  ;;  %v1964_v49 = vmul.f32 %v2540_v1, %v3524_v2  ;;  %v2046_v23 = vadd.f32 %v2045_v8, %v2044_v56 }
 0x486   :  { %v2156_v51 = vadd.f32 %v2155_v52, %v2154_v32  ;;  %v2161_v6 = vadd.f32 %v2160_v41, %v2159_v7  ;;  %v2062_v55 = vrot.slane %v2061_v47, 4  ;;  %v3545_v29 = vadd.f32 %v2141_v0, %v2140_v28  ;;  %v2543_v52 = vld [vmem:[#allocation2 + $0x68] sm:$0xff] }
 0x487   :  { %v1892_v4 = vsel %vm806_vm2, %v1799_v60, %v1891_v63  ;;  %v1859_v10 = vrot.slane %v3500_v61, %v2877_v16  ;;  %v2068_v36 = vsel %vm86_vm0, %v1964_v49, 0.0  ;;  %v2052_v27 = vrot.slane %v2051_v17, 1 }
 0x488   :  { %v3543_v31 = vpop.permute.xlu1 %1745  ;;  %v2058_v15 = vadd.f32 %v2057_v5, %v2056_v20  ;;  %v2167_v33 = vrot.slane %v2166_v44, 4  ;;  %v2063_v3 = vadd.f32 %v2062_v55, %v2061_v47  ;;  %v3551_v45 = vpop.permute.xlu0 %1700  ;;  %v1863_v38 = vrot.slane %v3509_v11, %v2877_v16  ;;  %v2542_v11 = vld [vmem:[#allocation2 + $0xe0] sm:$0xff] }
 0x489   :  { %v1803_v53 = vrot.slane %v3512_v19, %v2877_v16  ;;  %v2069_v57 = vrot.slane %v2068_v36, 4  ;;  %v1979_v30 = vmul.f32 %v2541_v12, %v3531_v54  ;;  %v3559_v61 = vsel %vm810_vm4, %v2130_v48, %v2256_v37 }
 0x48a   :  { %v2157_v39 = vrot.slane %v2156_v51, 1  ;;  %v2162_v43 = vrot.slane %v2161_v6, 2  ;;  %v2064_v14 = vrot.slane %v2063_v3, 2  ;;  %v1905_v56 = vsel %vm804_vm1, %v1859_v10, %v1855_v13 }
 0x48b   :  { %v1807_v32 = vrot.slane %v3524_v2, %v2877_v16  ;;  %v2070_v46 = vadd.f32 %v2069_v57, %v2068_v36  ;;  %v1980_v21 = vmul.f32 %v2542_v11, %v3543_v31  ;;  %v2053_v19 = vadd.f32 %v2052_v27, %v2051_v17  ;;  %v2544_v17 = vld [vmem:[#allocation2 + $0x70] sm:$0xff]  ;;  %v2545_v36 = vld [vmem:[#allocation2 + $0xe8] sm:$0xff] }
 0x48c   :  { %v2059_v28 = vrot.slane %v2058_v15, 1  ;;  %v2168_v18 = vadd.f32 %v2167_v33, %v2166_v44  ;;  %v2173_v35 = vsel %vm86_vm0, %v1979_v30, 0.0  ;;  %v1704_v62 = vpop.permute.xlu1 %1703  ;;  %v2143_v42 = vrot.slane %v3545_v29, 1  ;;  %v3576_v7 = vpop.permute.xlu0 %1748 }
 0x48d   :  { %v1906_v25 = vsel %vm806_vm2, %v1863_v38, %v1905_v56  ;;  %v1893_v9 = vsel %vm808_vm3, %v1803_v53, %v1892_v4  ;;  %v2180_v13 = vsel %vm86_vm0, %v1980_v21, 0.0  ;;  %v3570_v40 = vadd.f32 %v2157_v39, %v2156_v51  ;;  %v2546_v56 = vld [vmem:[#allocation2 + $0xf0] sm:$0xff] }
 0x48e   :  { %v3572_v2 = vadd.f32 %v2162_v43, %v2161_v6  ;;  %v2065_v58 = vadd.f32 %v2064_v14, %v2063_v3  ;;  %v1867_v20 = vrot.slane %v3531_v54, %v2877_v16  ;;  %v1894_v26 = vsel %vm810_vm4, %v1807_v32, %v1893_v9 }
 0x48f   :  { %v2071_v34 = vrot.slane %v2070_v46, 2  ;;  %v2174_v8 = vrot.slane %v2173_v35, 4  ;;  %v1965_v41 = vmul.f32 %v2543_v52, %v3551_v45  ;;  %v2247_v37 = vsel %vm804_vm1, %v2053_v19, %v2046_v23 }
 0x490   :  { %v2060_v0 = vadd.f32 %v2059_v28, %v2058_v15  ;;  %v2169_v60 = vrot.slane %v2168_v18, 2  ;;  %v2181_v50 = vrot.slane %v2180_v13, 4  ;;  %v1871_v22 = vrot.slane %v3543_v31, %v2877_v16  ;;  %v1752_v49 = vpop.permute.xlu1 %1751  ;;  %v1707_v15 = vpop.permute.xlu0 %1706 }
 0x491   :  { %v1811_v54 = vrot.slane %v3551_v45, %v2877_v16  ;;  %v2075_v63 = vsel %vm86_vm0, %v1965_v41, 0.0  ;;  %v1966_v5 = vmul.f32 %v2544_v17, %v1704_v62  ;;  %v2164_v48 = vrot.slane %v3572_v2, 1 }
 0x492   :  { %v2066_v44 = vrot.slane %v2065_v58, 1  ;;  %v1907_v47 = vsel %vm808_vm3, %v1867_v20, %v1906_v25  ;;  %v2076_v1 = vrot.slane %v2075_v63, 4  ;;  %v3588_v23 = vadd.f32 %v2071_v34, %v2070_v46  ;;  %v2547_v25 = vld [vmem:[#allocation2 + $0x78] sm:$0xff] }
 0x493   :  { %v2175_v51 = vadd.f32 %v2174_v8, %v2173_v35  ;;  %v1815_v6 = vrot.slane %v1704_v62, %v2877_v16  ;;  %v2082_v55 = vsel %vm86_vm0, %v1966_v5, 0.0  ;;  %v2182_v31 = vadd.f32 %v2181_v50, %v2180_v13 }
 0x494   :  { %v2077_v4 = vadd.f32 %v2076_v1, %v2075_v63  ;;  %v2083_v10 = vrot.slane %v2082_v55, 4  ;;  %v1981_v27 = vmul.f32 %v2545_v36, %v3576_v7  ;;  %v3594_v33 = vsel %vm806_vm2, %v2060_v0, %v2247_v37  ;;  %v1731_v28 = vpop.permute.xlu1 %1730  ;;  %v1755_v34 = vpop.permute.xlu0 %1754  ;;  %v2548_v63 = vld [vmem:[#allocation2 + $0xb8] sm:$0xff] }
 0x495   :  { %v3596_v3 = vadd.f32 %v2169_v60, %v2168_v18  ;;  %v1908_v45 = vsel %vm810_vm4, %v1871_v22, %v1907_v47  ;;  %v1895_v38 = vsel %vm812_vm5, %v1811_v54, %v1894_v26  ;;  %v3600_v53 = vadd.f32 %v2066_v44, %v2065_v58 }
 0x496   :  { %v2078_v57 = vrot.slane %v2077_v4, 2  ;;  %v2084_v12 = vadd.f32 %v2083_v10, %v2082_v55  ;;  %v2187_v30 = vsel %vm86_vm0, %v1981_v27, 0.0  ;;  %v2073_v39 = vrot.slane %v3588_v23, 1 }
 0x497   :  { %v2176_v43 = vrot.slane %v2175_v51, 2  ;;  %v2188_v14 = vrot.slane %v2187_v30, 4  ;;  %v1982_v32 = vmul.f32 %v2546_v56, %v1752_v49  ;;  %v2183_v46 = vrot.slane %v2182_v31, 2 }
 0x498   :  { %v1896_v11 = vsel %vm814_vm6, %v1815_v6, %v1895_v38  ;;  %v2085_v21 = vrot.slane %v2084_v12, 2  ;;  %v1819_v19 = vrot.slane %v1707_v15, %v2877_v16  ;;  %v1875_v18 = vrot.slane %v3576_v7, %v2877_v16 }
 0x499   :  { %v2189_v35 = vadd.f32 %v2188_v14, %v2187_v30  ;;  %v2194_v62 = vsel %vm86_vm0, %v1982_v32, 0.0  ;;  %v1967_v9 = vmul.f32 %v2547_v25, %v1707_v15  ;;  %v2079_v13 = vadd.f32 %v2078_v57, %v2077_v4 }
 0x49a   :  { %v1879_v58 = vrot.slane %v1752_v49, %v2877_v16  ;;  %v2195_v20 = vrot.slane %v2194_v62, 4  ;;  %v1897_v26 = vsel %vm816_vm7, %v1819_v19, %v1896_v11  ;;  %v2177_v8 = vadd.f32 %v2176_v43, %v2175_v51 }
 0x49b   :  { %v2086_v52 = vadd.f32 %v2085_v21, %v2084_v12  ;;  %1917 = vst.msk [vmem:[%s3684_s4 + $0x8] sm:$0xff] %vm843_vm8, %v1897_v26  ;;  %v2089_v7 = vsel %vm86_vm0, %v1967_v9, 0.0  ;;  %v1851_v41 = vrot.slane %v1731_v28, %v2877_v16  ;;  %v2184_v37 = vadd.f32 %v2183_v46, %v2182_v31 }
 0x49c   :  { %v2190_v0 = vrot.slane %v2189_v35, 2  ;;  %v2196_v60 = vadd.f32 %v2195_v20, %v2194_v62  ;;  %v2090_v50 = vrot.slane %v2089_v7, 4  ;;  %v1909_v22 = vsel %vm812_vm5, %v1875_v18, %v1908_v45 }
 0x49d   :  { %v1904_v54 = vsel %vm816_vm7, %v1851_v41, %v3529_v59  ;;  %v1975_v17 = vmul.f32 %v2548_v63, %v1731_v28  ;;  %v1883_v5 = vrot.slane %v1755_v34, %v2877_v16  ;;  %v2080_v44 = vrot.slane %v2079_v13, 1  ;;  %v2549_v59 = vld [vmem:[#allocation2 + $0xf8] sm:$0xff] }
 0x49e   :  { %v1910_v47 = vsel %vm814_vm6, %v1879_v58, %v1909_v22  ;;  %v2197_v1 = vrot.slane %v2196_v60, 2  ;;  %v2091_v49 = vadd.f32 %v2090_v50, %v2089_v7  ;;  %1918 = vst.msk [vmem:[%s3684_s4 + $0x10] sm:$0xff] %vm843_vm8, %v1904_v54  ;;  %v2087_v51 = vrot.slane %v2086_v52, 1 }
 0x49f   :  { %v2145_v6 = vsel %vm86_vm0, %v1975_v17, 0.0  ;;  %v1911_v55 = vsel %vm816_vm7, %v1883_v5, %v1910_v47  ;;  %v1983_v31 = vmul.f32 %v2549_v59, %v1755_v34  ;;  %v2171_v4 = vrot.slane %v3596_v3, 1 }
 0x4a0   :  { %v2191_v16 = vadd.f32 %v2190_v0, %v2189_v35  ;;  %v2092_v10 = vrot.slane %v2091_v49, 2  ;;  %v2146_v36 = vrot.slane %v2145_v6, 4  ;;  %1919 = vst.msk [vmem:[%s3684_s4 + $0x18] sm:$0xff] %vm843_vm8, %v1911_v55  ;;  %v2074_v27 = vadd.f32 %v2073_v39, %v3588_v23  ;;  %s2627_s4 = smov [#allocation7]  }
 0x4a1   :  { %v2178_v15 = vrot.slane %v2177_v8, 1  ;;  %v2198_v45 = vadd.f32 %v2197_v1, %v2196_v60  ;;  %v2201_v38 = vsel %vm86_vm0, %v1983_v31, 0.0  ;;  %v2081_v57 = vadd.f32 %v2080_v44, %v2079_v13  ;;  %s2281_s29 = sshll.u32 %s2627_s4, 4  ;;  %s2282_s29 = int_to_ptr.vmem [resolvable:$true] %s2281_s29 }
 0x4a2   :  { %v2093_v12 = vadd.f32 %v2092_v10, %v2091_v49  ;;  %v2147_v30 = vadd.f32 %v2146_v36, %v2145_v6  ;;  %v2202_v43 = vrot.slane %v2201_v38, 4  ;;  %v2165_v14 = vadd.f32 %v2164_v48, %v3572_v2  ;;  %s2594_s30 = scalar_lea.vmem %s2282_s29, 512  ;;  %p2599_p3 = scmp.lt.s32.totalorder %s2282_s29, %s2282_s29 }
 0x4a3   :  { %v2249_v56 = vsel %vm808_vm3, %v3600_v53, %v3594_v33  ;;  %v2185_v32 = vrot.slane %v2184_v37, 1  ;;  %v2088_v46 = vadd.f32 %v2087_v51, %v2086_v52  ;;  %v2192_v11 = vrot.slane %v2191_v16, 1  ;;  %p2595_p2 = scmp.ne.s32.totalorder %s2282_s29, %s2594_s30  ;;  %p2600_p4 = scmp.lt.s32.totalorder %s2594_s30, %s2594_s30 }
 0x4a4   :  { %v2094_v23 = vrot.slane %v2093_v12, 1  ;;  %v2148_v39 = vrot.slane %v2147_v30, 2  ;;  %v2203_v21 = vadd.f32 %v2202_v43, %v2201_v38  ;;  %v2172_v19 = vadd.f32 %v2171_v4, %v3596_v3 }
 0x4a5   :  { %v2250_v28 = vsel %vm810_vm4, %v2074_v27, %v2249_v56  ;;  %v2179_v18 = vadd.f32 %v2178_v15, %v2177_v8  ;;  %v2199_v35 = vrot.slane %v2198_v45, 1  ;;  %v2144_v33 = vadd.f32 %v2143_v42, %v3545_v29  ;;  %p2601_p5 = por %p2600_p4, %p2599_p3 }
 0x4a6   :  { %v2251_v62 = vsel %vm812_vm5, %v2081_v57, %v2250_v28  ;;  %v2095_v25 = vadd.f32 %v2094_v23, %v2093_v12  ;;  %v2149_v2 = vadd.f32 %v2148_v39, %v2147_v30  ;;  %v2204_v48 = vrot.slane %v2203_v21, 2 }
 0x4a7   :  { %v2261_v53 = vsel %vm804_vm1, %v2165_v14, %v3570_v40  ;;  %v2186_v9 = vadd.f32 %v2185_v32, %v2184_v37  ;;  %v2252_v13 = vsel %vm814_vm6, %v2088_v46, %v2251_v62  ;;  %v2193_v3 = vadd.f32 %v2192_v11, %v2191_v16  ;;  %p2602_p6 = pnand %p2601_p5, %p2595_p2 }
 0x4a8   :  { %v2150_v58 = vrot.slane %v2149_v2, 1  ;;  %v2205_v20 = vadd.f32 %v2204_v48, %v2203_v21  ;;  %v2253_v26 = vsel %vm816_vm7, %v2095_v25, %v2252_v13  ;;  %v2262_v34 = vsel %vm806_vm2, %v2172_v19, %v2261_v53 }
 0x4a9   :  { %v2200_v8 = vadd.f32 %v2199_v35, %v2198_v45  ;;  %2273 = vst.msk [vmem:[#allocation7 + $0x8] sm:$0xff] %vm86_vm0, %v2253_v26  ;;  %v2263_v52 = vsel %vm808_vm3, %v2179_v18, %v2262_v34  ;;  %v2258_v42 = vsel %vm812_vm5, %v3537_v24, %v3559_v61 }
 0x4aa   :  { %v2151_v7 = vadd.f32 %v2150_v58, %v2149_v2  ;;  %v2206_v29 = vrot.slane %v2205_v20, 1  ;;  %v2264_v40 = vsel %vm810_vm4, %v2186_v9, %v2263_v52  ;;  %v2259_v41 = vsel %vm814_vm6, %v2144_v33, %v2258_v42 }
 0x4ab   :  { %v2265_v37 = vsel %vm812_vm5, %v2193_v3, %v2264_v40 }
 0x4ac   :  { %v2207_v0 = vadd.f32 %v2206_v29, %v2205_v20  ;;  %v2260_v60 = vsel %vm816_vm7, %v2151_v7, %v2259_v41  ;;  %v2266_v50 = vsel %vm814_vm6, %v2200_v8, %v2265_v37 }
 0x4ad   :  { %2274 = vst.msk [vmem:[#allocation7 + $0x10] sm:$0xff] %vm86_vm0, %v2260_v60 }
 0x4ae   :  { %v2267_v22 = vsel %vm816_vm7, %v2207_v0, %v2266_v50 }
 0x4af   :  { %2275 = vst.msk [vmem:[#allocation7 + $0x18] sm:$0xff] %vm86_vm0, %v2267_v22 }
 0x4b0   :  { %2605 = shalt.err (!%p2602_p6)
}
 0x4b1   :  { %s2606_s7 = scalar_lea.hbm %s3683_s3, 512 }
 0x4b2   :  { %p2607_p7 = scmp.ne.s32.totalorder %s3683_s3, %s2606_s7  ;;  %p2610_p8 = scmp.lt.u32.totalorder %s2606_s7, %s3683_s3 }
 0x4b4   :  { %p2612_p9 = pnand %p2610_p8, %p2607_p7 }
 0x4b6   :  { %2615 = shalt.err (!%p2612_p9)
}
 0x4b7   :  { %2287 = dma.vmem_to_hbm [thread:$0]  %s2282_s29, 512, %s3683_s3, [#allocation4], %s2623_s25, %s2623_s25, %s2624_s26  }
 0x4b8   :  { %2620 = dma.done.wait [#allocation4], 512  }
 0x4b9   :  { %2621 = vsyncadd [#allocation4], 4294966784 }
 0x4ba   :  { %2295 = vsyncpa [#allocation3], 1 }
 0x4bb   :  { %2296 = vsyncpa [#allocation6], 1 }
 0x4bc   :  { %2297 = vsyncpa [#allocation4], 1 }

</bundles_post_ra>
